<compile_context>
chip_gen: v5e
topology: v5e:2x2
jax: 0.10.0
libtpu: 0.0.40
codegen_flags: <defaults>
</compile_context>

<pallas_src>
import functools

import jax
import jax.numpy as jnp
from jax import lax
from jax.experimental import pallas as pl
from jax.experimental.pallas import tpu as pltpu


def _residual_layer_kernel(x_ref, w3_ref, w1_ref, out_ref, xp_ref, *,
                           apply_final_relu):
    # x_ref  : (1, H, W, Cin)    full image (resident in VMEM across row tiles)
    # w3_ref : (9*Cin, Cmid_p)   3x3 conv weights as one im2col matmul operand
    # w1_ref : (Cmid_p, Cout)    1x1 conv weights (rows zero-padded to Cmid_p)
    # out_ref: (1, TH, W, Cout)  one row tile of the layer output
    # xp_ref : (TH+2, W+2, Cin)  VMEM scratch: zero-padded ReLU(x) window (with halo)
    _, TH, W, Cout = out_ref.shape
    Cin = x_ref.shape[3]

    t = pl.program_id(1)
    n_t = pl.num_programs(1)
    row0 = pl.multiple_of(t * TH, TH)          # first image row of this tile

    # --- stage ReLU(x) (+ halo rows) into the zero-padded scratch --------------
    # Zeroing the whole scratch is cheap and guarantees the conv's zero padding at
    # the true image borders (left/right columns, top/bottom halo rows).
    xp_ref[...] = jnp.zeros_like(xp_ref)

    x_tile = x_ref[0, pl.ds(row0, TH), :, :]                       # (TH, W, Cin)
    xp_ref[1:TH + 1, 1:W + 1, :] = jnp.maximum(x_tile, 0.0).astype(xp_ref.dtype)

    @pl.when(t > 0)
    def _():
        top = x_ref[0, pl.ds(row0 - 1, 1), :, :]
        xp_ref[0:1, 1:W + 1, :] = jnp.maximum(top, 0.0).astype(xp_ref.dtype)

    @pl.when(t < n_t - 1)
    def _():
        bot = x_ref[0, pl.ds(row0 + TH, 1), :, :]
        xp_ref[TH + 1:TH + 2, 1:W + 1, :] = jnp.maximum(bot, 0.0).astype(xp_ref.dtype)

    # --- 3x3 conv as a single im2col matmul (K = 9*Cin, N = Cmid_p >= 128) -----
    wins = []
    for k in range(9):
        ky, kx = divmod(k, 3)
        wins.append(xp_ref[ky:ky + TH, kx:kx + W, :])              # (TH, W, Cin)
    col = jnp.concatenate(wins, axis=2).reshape(TH * W, 9 * Cin)   # (TH*W, 9*Cin)

    h = jnp.dot(col, w3_ref[...], preferred_element_type=jnp.float32)
    h = jnp.maximum(h, 0.0)

    # --- 1x1 conv + residual add (+ the stack's trailing ReLU on the last layer)
    y = jnp.dot(h, w1_ref[...], preferred_element_type=jnp.float32)  # (TH*W, Cout)
    res = y.reshape(TH, W, Cout) + x_tile
    if apply_final_relu:
        res = jnp.maximum(res, 0.0)
    out_ref[0] = res.astype(out_ref.dtype)


def _residual_layer(x, w3r, w1p, row_tile, *, apply_final_relu):
    B, H, W, Cin = x.shape
    K9, Cmid_p = w3r.shape
    Cout = w1p.shape[1]
    n_t = H // row_tile

    kernel = functools.partial(_residual_layer_kernel,
                               apply_final_relu=apply_final_relu)
    return pl.pallas_call(
        kernel,
        out_shape=jax.ShapeDtypeStruct((B, H, W, Cout), x.dtype),
        grid_spec=pltpu.PrefetchScalarGridSpec(
            num_scalar_prefetch=0,
            grid=(B, n_t),
            in_specs=[
                # Block index does not depend on the row-tile axis -> the image is
                # fetched once per batch element and reused for all its row tiles.
                pl.BlockSpec((1, H, W, Cin), lambda b, t: (b, 0, 0, 0)),
                pl.BlockSpec((K9, Cmid_p), lambda b, t: (0, 0)),
                pl.BlockSpec((Cmid_p, Cout), lambda b, t: (0, 0)),
            ],
            out_specs=pl.BlockSpec((1, row_tile, W, Cout),
                                   lambda b, t: (b, t, 0, 0)),
            scratch_shapes=[pltpu.VMEM((row_tile + 2, W + 2, Cin), x.dtype)],
        ),
        compiler_params=pltpu.CompilerParams(
            dimension_semantics=("parallel", "parallel"),
            vmem_limit_bytes=32 * 1024 * 1024,   # safe on v5e/v6e/v7x; ample for tiles
        ),
    )(x, w3r, w1p)


def _pick_row_tile(H, W):
    """Largest divisor of H giving ~>=128 rows in the matmul M dim (and small VMEM)."""
    target = max(8, -(-128 // W))
    th = 1
    for cand in range(1, H + 1):
        if H % cand == 0 and cand <= target:
            th = cand
    return th


def residual_stack_forward(x_nhwc, w3, w1, num_residual_layers, *, row_tile=None):
    """ResidualStack forward.

    x_nhwc: (B, H, W, Cin)  -- NHWC (avoids relayout passes; callers with NCHW
                               graphs should transpose once outside).
    w3    : (3, 3, Cin, Cmid)  HWIO 3x3 conv weights (shared across layers).
    w1    : (Cmid, Cout)       1x1 conv weights (shared across layers).
    """
    assert num_residual_layers >= 1
    B, H, W, Cin = x_nhwc.shape
    kh, kw, cin_w, Cmid = w3.shape
    Cout = w1.shape[1]
    assert (kh, kw) == (3, 3) and cin_w == Cin
    assert Cout == Cin, "residual add requires num_hiddens == in_channels"

    # Host-side weight prep, done once (weights are shared across the L layers):
    # reshape the 3x3 kernel into the single im2col operand and lane-pad the mid
    # channels to a multiple of 128 so the MXU output dimension is dense.  The
    # zero columns of w3r / zero rows of w1p make this numerically exact.
    Cmid_p = max(128, -(-Cmid // 128) * 128)
    w3r = jnp.pad(w3.reshape(9 * Cin, Cmid), ((0, 0), (0, Cmid_p - Cmid)))
    w1p = jnp.pad(w1, ((0, Cmid_p - Cmid), (0, 0)))

    th = row_tile if row_tile is not None else _pick_row_tile(H, W)
    assert H % th == 0, "row tile must divide H"

    x = x_nhwc
    for i in range(num_residual_layers):
        x = _residual_layer(x, w3r, w1p, th,
                            apply_final_relu=(i == num_residual_layers - 1))
    return x


def residual_stack_reference(x_nhwc, w3, w1, num_residual_layers):
    """Pure-JAX reference (XLA convs, NHWC) for correctness checking."""
    Cmid, Cout = w1.shape
    w1_hwio = w1.reshape(1, 1, Cmid, Cout)

    def block(x):
        h = jnp.maximum(x, 0.0)
        h = lax.conv_general_dilated(
            h, w3, window_strides=(1, 1), padding=((1, 1), (1, 1)),
            dimension_numbers=("NHWC", "HWIO", "NHWC"),
            precision=lax.Precision.HIGHEST)
        h = jnp.maximum(h, 0.0)
        h = lax.conv_general_dilated(
            h, w1_hwio, window_strides=(1, 1), padding="VALID",
            dimension_numbers=("NHWC", "HWIO", "NHWC"),
            precision=lax.Precision.HIGHEST)
        return x + h

    for _ in range(num_residual_layers):
        x_nhwc = block(x_nhwc)
    return jnp.maximum(x_nhwc, 0.0)


if __name__ == "__main__":
    # Small shapes consistent with the module: in_channels == num_hiddens (needed
    # for the residual add) plus num_residual_hiddens for the bottleneck; the
    # PyTorch ModuleList shares ONE block's weights across all layers.
    B, H, W = 2, 16, 16
    in_channels = 32          # == num_hiddens
    num_hiddens = 32
    num_residual_hiddens = 16
    num_residual_layers = 2

    key = jax.random.PRNGKey(0)
    kx_, k3, k1 = jax.random.split(key, 3)
    x = jax.random.normal(kx_, (B, H, W, in_channels), dtype=jnp.float32)  # NHWC
    w3 = 0.1 * jax.random.normal(
        k3, (3, 3, in_channels, num_residual_hiddens), dtype=jnp.float32)
    w1 = 0.1 * jax.random.normal(
        k1, (num_residual_hiddens, num_hiddens), dtype=jnp.float32)

    out = residual_stack_forward(x, w3, w1, num_residual_layers)
    out = jax.block_until_ready(out)

    ref = jax.block_until_ready(
        residual_stack_reference(x, w3, w1, num_residual_layers))
    assert out.shape == (B, H, W, num_hiddens)
    assert jnp.allclose(out, ref, atol=1e-3, rtol=1e-3), "mismatch vs reference"

    print("KERNEL_OK")
</pallas_src>

<mosaic_0001>
module attributes {stable_mosaic.version = 11 : i64} {
  func.func @_residual_layer_kernel(%arg0: i32, %arg1: i32, %arg2: memref<1x16x16x32xf32, #tpu.memory_space<vmem>>, %arg3: memref<288x128xf32, #tpu.memory_space<vmem>>, %arg4: memref<128x32xf32, #tpu.memory_space<vmem>>, %arg5: memref<1x8x16x32xf32, #tpu.memory_space<vmem>>, %arg6: memref<10x18x32xf32, #tpu.memory_space<vmem>>) attributes {dimension_semantics = [#tpu.dimension_semantics<parallel>, #tpu.dimension_semantics<parallel>], iteration_bounds = array<i64: 2, 2>, scalar_prefetch = 0 : i64, scratch_operands = 1 : i64, tpu.core_type = #tpu.core_type<tc>, window_params = [{transform_indices = @transform_0, window_bounds = array<i64: 1, 16, 16, 32>}, {pipeline_mode = #tpu.pipeline_mode<synchronous>, transform_indices = @transform_1, window_bounds = array<i64: 288, 128>}, {pipeline_mode = #tpu.pipeline_mode<synchronous>, transform_indices = @transform_2, window_bounds = array<i64: 128, 32>}, {transform_indices = @transform_3, window_bounds = array<i64: 1, 8, 16, 32>}]} {
    %c8_i32 = arith.constant 8 : i32
    %0 = arith.muli %arg1, %c8_i32 : i32
    %1 = tpu.assume_multiple %0, 8 : i32
    %cst = arith.constant 0.000000e+00 : f32
    %2 = vector.broadcast %cst : f32 to vector<10x18x32xf32>
    %c0 = arith.constant 0 : index
    %c0_0 = arith.constant 0 : index
    %c0_1 = arith.constant 0 : index
    %3 = vector.load %arg6[%c0, %c0_0, %c0_1] : memref<10x18x32xf32, #tpu.memory_space<vmem>>, vector<10x18x32xf32>
    tpu.vector_store %arg6[%c0, %c0_0, %c0_1], %2 {strides = array<i32>} : memref<10x18x32xf32, #tpu.memory_space<vmem>>, vector<10x18x32xf32>,
    %c0_2 = arith.constant 0 : index
    %4 = arith.index_cast %1 : i32 to index
    %c0_3 = arith.constant 0 : index
    %c0_4 = arith.constant 0 : index
    %5 = vector.load %arg2[%c0_2, %4, %c0_3, %c0_4] : memref<1x16x16x32xf32, #tpu.memory_space<vmem>>, vector<1x8x16x32xf32>
    %6 = vector.shape_cast %5 : vector<1x8x16x32xf32> to vector<8x16x32xf32>
    %cst_5 = arith.constant 0.000000e+00 : f32
    %7 = vector.broadcast %cst_5 : f32 to vector<8x16x32xf32>
    %8 = arith.maximumf %6, %7 : vector<8x16x32xf32>
    %c1 = arith.constant 1 : index
    %c1_6 = arith.constant 1 : index
    %c0_7 = arith.constant 0 : index
    %9 = vector.load %arg6[%c1, %c1_6, %c0_7] : memref<10x18x32xf32, #tpu.memory_space<vmem>>, vector<8x16x32xf32>
    tpu.vector_store %arg6[%c1, %c1_6, %c0_7], %8 {strides = array<i32>} : memref<10x18x32xf32, #tpu.memory_space<vmem>>, vector<8x16x32xf32>,
    %c0_i32 = arith.constant 0 : i32
    %10 = arith.cmpi sgt, %arg1, %c0_i32 : i32
    %11 = arith.extui %10 : i1 to i32
    %c0_i32_8 = arith.constant 0 : i32
    %12 = arith.cmpi ne, %11, %c0_i32_8 : i32
    scf.if %12 {
      %c1_i32_47 = arith.constant 1 : i32
      %38 = arith.subi %1, %c1_i32_47 : i32
      %c0_48 = arith.constant 0 : index
      %39 = arith.index_cast %38 : i32 to index
      %c0_49 = arith.constant 0 : index
      %c0_50 = arith.constant 0 : index
      %40 = vector.load %arg2[%c0_48, %39, %c0_49, %c0_50] : memref<1x16x16x32xf32, #tpu.memory_space<vmem>>, vector<1x1x16x32xf32>
      %41 = vector.shape_cast %40 : vector<1x1x16x32xf32> to vector<1x16x32xf32>
      %cst_51 = arith.constant 0.000000e+00 : f32
      %42 = vector.broadcast %cst_51 : f32 to vector<1x16x32xf32>
      %43 = arith.maximumf %41, %42 : vector<1x16x32xf32>
      %c0_52 = arith.constant 0 : index
      %c1_53 = arith.constant 1 : index
      %c0_54 = arith.constant 0 : index
      %44 = vector.load %arg6[%c0_52, %c1_53, %c0_54] : memref<10x18x32xf32, #tpu.memory_space<vmem>>, vector<1x16x32xf32>
      tpu.vector_store %arg6[%c0_52, %c1_53, %c0_54], %43 {strides = array<i32>} : memref<10x18x32xf32, #tpu.memory_space<vmem>>, vector<1x16x32xf32>,
    } else {
    }
    %c1_i32 = arith.constant 1 : i32
    %13 = arith.cmpi slt, %arg1, %c1_i32 : i32
    %14 = arith.extui %13 : i1 to i32
    %c0_i32_9 = arith.constant 0 : i32
    %15 = arith.cmpi ne, %14, %c0_i32_9 : i32
    scf.if %15 {
      %c8_i32_47 = arith.constant 8 : i32
      %38 = arith.addi %1, %c8_i32_47 : i32
      %c0_48 = arith.constant 0 : index
      %39 = arith.index_cast %38 : i32 to index
      %c0_49 = arith.constant 0 : index
      %c0_50 = arith.constant 0 : index
      %40 = vector.load %arg2[%c0_48, %39, %c0_49, %c0_50] : memref<1x16x16x32xf32, #tpu.memory_space<vmem>>, vector<1x1x16x32xf32>
      %41 = vector.shape_cast %40 : vector<1x1x16x32xf32> to vector<1x16x32xf32>
      %cst_51 = arith.constant 0.000000e+00 : f32
      %42 = vector.broadcast %cst_51 : f32 to vector<1x16x32xf32>
      %43 = arith.maximumf %41, %42 : vector<1x16x32xf32>
      %c9 = arith.constant 9 : index
      %c1_52 = arith.constant 1 : index
      %c0_53 = arith.constant 0 : index
      %44 = vector.load %arg6[%c9, %c1_52, %c0_53] : memref<10x18x32xf32, #tpu.memory_space<vmem>>, vector<1x16x32xf32>
      tpu.vector_store %arg6[%c9, %c1_52, %c0_53], %43 {strides = array<i32>} : memref<10x18x32xf32, #tpu.memory_space<vmem>>, vector<1x16x32xf32>,
    } else {
    }
    %c0_10 = arith.constant 0 : index
    %c0_11 = arith.constant 0 : index
    %c0_12 = arith.constant 0 : index
    %16 = vector.load %arg6[%c0_10, %c0_11, %c0_12] : memref<10x18x32xf32, #tpu.memory_space<vmem>>, vector<8x16x32xf32>
    %c0_13 = arith.constant 0 : index
    %c1_14 = arith.constant 1 : index
    %c0_15 = arith.constant 0 : index
    %17 = vector.load %arg6[%c0_13, %c1_14, %c0_15] : memref<10x18x32xf32, #tpu.memory_space<vmem>>, vector<8x16x32xf32>
    %c0_16 = arith.constant 0 : index
    %c2 = arith.constant 2 : index
    %c0_17 = arith.constant 0 : index
    %18 = vector.load %arg6[%c0_16, %c2, %c0_17] : memref<10x18x32xf32, #tpu.memory_space<vmem>>, vector<8x16x32xf32>
    %c1_18 = arith.constant 1 : index
    %c0_19 = arith.constant 0 : index
    %c0_20 = arith.constant 0 : index
    %19 = vector.load %arg6[%c1_18, %c0_19, %c0_20] : memref<10x18x32xf32, #tpu.memory_space<vmem>>, vector<8x16x32xf32>
    %c1_21 = arith.constant 1 : index
    %c1_22 = arith.constant 1 : index
    %c0_23 = arith.constant 0 : index
    %20 = vector.load %arg6[%c1_21, %c1_22, %c0_23] : memref<10x18x32xf32, #tpu.memory_space<vmem>>, vector<8x16x32xf32>
    %c1_24 = arith.constant 1 : index
    %c2_25 = arith.constant 2 : index
    %c0_26 = arith.constant 0 : index
    %21 = vector.load %arg6[%c1_24, %c2_25, %c0_26] : memref<10x18x32xf32, #tpu.memory_space<vmem>>, vector<8x16x32xf32>
    %c2_27 = arith.constant 2 : index
    %c0_28 = arith.constant 0 : index
    %c0_29 = arith.constant 0 : index
    %22 = vector.load %arg6[%c2_27, %c0_28, %c0_29] : memref<10x18x32xf32, #tpu.memory_space<vmem>>, vector<8x16x32xf32>
    %c2_30 = arith.constant 2 : index
    %c1_31 = arith.constant 1 : index
    %c0_32 = arith.constant 0 : index
    %23 = vector.load %arg6[%c2_30, %c1_31, %c0_32] : memref<10x18x32xf32, #tpu.memory_space<vmem>>, vector<8x16x32xf32>
    %c2_33 = arith.constant 2 : index
    %c2_34 = arith.constant 2 : index
    %c0_35 = arith.constant 0 : index
    %24 = vector.load %arg6[%c2_33, %c2_34, %c0_35] : memref<10x18x32xf32, #tpu.memory_space<vmem>>, vector<8x16x32xf32>
    %25 = tpu.concatenate %16, %17, %18, %19, %20, %21, %22, %23, %24 in 2 : vector<8x16x32xf32>, vector<8x16x32xf32>, vector<8x16x32xf32>, vector<8x16x32xf32>, vector<8x16x32xf32>, vector<8x16x32xf32>, vector<8x16x32xf32>, vector<8x16x32xf32>, vector<8x16x32xf32> -> vector<8x16x288xf32>
    %26 = vector.shape_cast %25 : vector<8x16x288xf32> to vector<128x288xf32>
    %c0_36 = arith.constant 0 : index
    %c0_37 = arith.constant 0 : index
    %27 = vector.load %arg3[%c0_36, %c0_37] : memref<288x128xf32, #tpu.memory_space<vmem>>, vector<288x128xf32>
    %cst_38 = arith.constant dense<0.000000e+00> : vector<128x128xf32>
    %28 = tpu.matmul %26, %27, %cst_38 {dimension_numbers = #tpu.dot_dimension_numbers<[1], [0], [0], [1], [0, 0, 1, 1], [], []>} : vector<128x288xf32>, vector<288x128xf32>, vector<128x128xf32> -> vector<128x128xf32>
    %cst_39 = arith.constant 0.000000e+00 : f32
    %29 = vector.broadcast %cst_39 : f32 to vector<128x128xf32>
    %30 = arith.maximumf %28, %29 : vector<128x128xf32>
    %c0_40 = arith.constant 0 : index
    %c0_41 = arith.constant 0 : index
    %31 = vector.load %arg4[%c0_40, %c0_41] : memref<128x32xf32, #tpu.memory_space<vmem>>, vector<128x32xf32>
    %cst_42 = arith.constant dense<0.000000e+00> : vector<128x32xf32>
    %32 = tpu.matmul %30, %31, %cst_42 {dimension_numbers = #tpu.dot_dimension_numbers<[1], [0], [0], [1], [0, 0, 1, 1], [], []>} : vector<128x128xf32>, vector<128x32xf32>, vector<128x32xf32> -> vector<128x32xf32>
    %33 = vector.shape_cast %32 : vector<128x32xf32> to vector<8x16x32xf32>
    %34 = arith.addf %33, %6 : vector<8x16x32xf32>
    %c0_43 = arith.constant 0 : index
    %c0_44 = arith.constant 0 : index
    %c0_45 = arith.constant 0 : index
    %c0_46 = arith.constant 0 : index
    %35 = vector.load %arg5[%c0_43, %c0_44, %c0_45, %c0_46] : memref<1x8x16x32xf32, #tpu.memory_space<vmem>>, vector<1x8x16x32xf32>
    %36 = vector.shape_cast %35 : vector<1x8x16x32xf32> to vector<8x16x32xf32>
    %37 = vector.shape_cast %34 : vector<8x16x32xf32> to vector<1x8x16x32xf32>
    tpu.vector_store %arg5[%c0_43, %c0_44, %c0_45, %c0_46], %37 {strides = array<i32>} : memref<1x8x16x32xf32, #tpu.memory_space<vmem>>, vector<1x8x16x32xf32>,
    return
  }
  func.func @transform_0(%arg0: i32, %arg1: i32) -> (i32, i32, i32, i32) {
    %c0_i32 = arith.constant 0 : i32
    %c0_i32_0 = arith.constant 0 : i32
    %c0_i32_1 = arith.constant 0 : i32
    %c0_i32_2 = arith.constant 0 : i32
    return %arg0, %c0_i32, %c0_i32_0, %c0_i32_1 : i32, i32, i32, i32
  }
  func.func @transform_1(%arg0: i32, %arg1: i32) -> (i32, i32) {
    %c0_i32 = arith.constant 0 : i32
    %c0_i32_0 = arith.constant 0 : i32
    %c0_i32_1 = arith.constant 0 : i32
    return %c0_i32, %c0_i32_0 : i32, i32
  }
  func.func @transform_2(%arg0: i32, %arg1: i32) -> (i32, i32) {
    %c0_i32 = arith.constant 0 : i32
    %c0_i32_0 = arith.constant 0 : i32
    %c0_i32_1 = arith.constant 0 : i32
    return %c0_i32, %c0_i32_0 : i32, i32
  }
  func.func @transform_3(%arg0: i32, %arg1: i32) -> (i32, i32, i32, i32) {
    %c0_i32 = arith.constant 0 : i32
    %c0_i32_0 = arith.constant 0 : i32
    %c0_i32_1 = arith.constant 0 : i32
    return %arg0, %arg1, %c0_i32, %c0_i32_0 : i32, i32, i32, i32
  }
}

</mosaic_0001>

<bundles_post_ra>
// kernel: tpu_custom_call.1
= control target key start
LH: loop header
LB: loop body
LE: loop exit
PB: predicated region body
PF: predicated region fallthrough
CT: control target
= control target key end

     0   :  { %s2946_s0 = inlined_call_operand.hbm [shape: f32[2,16,16,32], index: 0, kind: input, shape index: {}]   ;;  %s2947_s1 = inlined_call_operand.hbm [shape: f32[288,128], index: 1, kind: input, shape index: {}]   ;;  %s2948_s2 = inlined_call_operand.vmem [shape: f32[128,32], index: 2, kind: input, shape index: {}]   ;;  %s2949_s3 = inlined_call_operand.hbm [shape: f32[2,16,16,32], index: 3, kind: output, shape index: {}]  }
   0x1   :  { %2974 = sst [smem:[#allocation32_spill]] %s2947_s1 }
   0x2   :  { %2975 = sst [smem:[#allocation33_spill]] %s2949_s3 }
   0x3   :  { %8 = vsyncpa [#allocation4], 0 }
   0x4   :  { %10 = vsyncpa [#allocation4 + $0x1], 0 }
   0x5   :  { %11 = vsyncpa [#allocation7], 0 }
   0x6   :  { %12 = vsyncpa [#allocation5], 0 }
   0x7   :  { %14 = vsyncpa [#allocation5 + $0x1], 0  ;;  %s2120_s12 = smov 0   ;;  %s2122_s13 = smov 0  }
   0x8   :  { %s2124_s14 = smov 0   ;;  %s2126_s15 = smov 0  }
   0x9   :  { %s2128_s16 = smov 0   ;;  %s2130_s17 = smov 0  }
   0xa   :  { %s2132_s18 = smov 0   ;;  %s2134_s19 = smov 0  }
   0xb   :  { %s2136_s20 = smov 0   ;;  %s2138_s21 = smov 0  }
   0xc   :  { %s2140_s22 = smov 0  }
   0xd LB: > { %2976 = sst [smem:[#allocation12_spill]] %s2049_s12  ;;  %s1493_s23 = sadd.s32 4294967295, %s2089_s22   ;;  %s2089_s22 = sphi %s2140_s22, %s20_s22   ;;  %s2085_s21 = sphi %s2138_s21, %s3034_s21   ;;  %s2081_s20 = sphi %s2136_s20, %s3025_s20   ;;  %s2077_s19 = sphi %s2134_s19, %s3033_s19   ;;  %s2073_s18 = sphi %s2132_s18, %s3024_s18   ;;  %s2069_s17 = sphi %s2130_s17, %s3032_s17   ;;  %s2065_s16 = sphi %s2128_s16, %s3031_s16   ;;  %s2061_s15 = sphi %s2126_s15, %s3030_s15   ;;  %s2057_s14 = sphi %s2124_s14, %s3029_s14   ;;  %s2053_s13 = sphi %s2122_s13, %s3028_s13   ;;  %s2049_s12 = sphi %s2120_s12, %s3027_s12  }
   0xe   : > { %2977 = sst [smem:[#allocation13_spill]] %s2081_s20  ;;  %s1494_s24 = sadd.s32 4294967294, %s2089_s22  }
   0xf   : > { %p52_p0 = scmp.ne.s32.totalorder %s2065_s16, %s2061_s15  ;;  %p2176_p1 = scmp.eq.s32.totalorder %s1493_s23, 0 }
  0x10   : > { %p119_p2 = scmp.ne.s32.totalorder %s2057_s14, %s2053_s13  ;;  %p120_p3 = scmp.eq.s32.totalorder %s1493_s23, 3 }
  0x11   : > { %p2184_p4 = por %p2176_p1, %p52_p0  ;;  %p125_p5 = scmp.ne.s32.totalorder %s2053_s13, %s2049_s12 }
  0x12   : > { %p2190_p6 = por %p120_p3, %p119_p2  ;;  %p126_p7 = scmp.eq.s32.totalorder %s1494_s24, 3 }
  0x13   : > { %p1495_p8 = scmp.ge.s32.totalorder %s2089_s22, 1  ;;  %p133_p9 = scmp.lt.s32.totalorder %s2089_s22, 5 }
  0x14   : > { %s2980_s27 = scalar_select %p2190_p6, 1, 0 }
  0x15   : > { %p2196_p10 = por %p126_p7, %p125_p5  ;;  %p2200_p11 = pnand %p1495_p8, %p133_p9 }
  0x16   : > { %2981 = sst [smem:[#allocation14_spill]] %s2980_s27  ;;  %s2091_s6 = smov [#allocation6]  }
  0x17   : > { %s2982_s28 = scalar_select %p2196_p10, 1, 0 }
  0x18   : > { %s2985_s1 = sld [smem:[#allocation32_spill]]  ;;  %p1550_p12 = pneg %p2200_p11 }
  0x19   : > { %2983 = sst [smem:[#allocation15_spill]] %s2982_s28  ;;  %s146_s7 = sshll.u32 %s2091_s6, 4  ;;  %s147_s7 = int_to_ptr.vmem [resolvable:$true] %s146_s7 }
  0x1a   : > { %p1551_p13 = pnand %p1550_p12, %p2176_p1  ;;  %s2950_s8 = smov 128  }
  0x1b   : > { %s2951_s9 = smov 8   ;;  %s29_s10 = sadd.s32 1, %s2081_s20 }
  0x1c   : > { %s32_s11 = sadd.s32 1, %s2085_s21  ;;  %p30_p0 = scmp.ge.s32.totalorder %s29_s10, 2 }
  0x1d   : > { %s39_s15 = sadd.s32 1, %s2069_s17  ;;  %p46_p2 = scmp.ne.s32.totalorder %s2069_s17, %s2065_s16 }
  0x1e   : > { %s144_s5 = sshll.u32 %s2985_s1, 4  ;;  %p47_p3 = scmp.eq.s32.totalorder %s2089_s22, 0  ;;  %s145_s5 = int_to_ptr.hbm [resolvable:$true] %s144_s5 }
  0x1f   : > { %1553 = dma.hbm_to_vmem [thread:$0]  (!%p1551_p13), %s145_s5, 4608, %s147_s7, [#allocation7], %s2950_s8, %s2950_s8, %s2951_s9  }
  0x20   : > { %s3036_s10 = smov (%p30_p0, %s29_s10), 0  ;;  %s3038_s11 = smov (!%p30_p0, %s32_s11), %s2085_s21 }
  0x21   : > { %2986 = sst [smem:[#allocation16_spill]] %s3036_s10  ;;  %p2223_p5 = por %p47_p3, %p46_p2 }
  0x22   : > { %s105_s24 = ssub.s32 %s2081_s20, %s3036_s10  ;;  %p34_p7 = scmp.ge.s32.totalorder %s3038_s11, 2 }
  0x23   : > { %s109_s30 = sadd.s32 1, %s2057_s14  ;;  %p1563_p8 = scmp.lt.s32.totalorder %s2089_s22, 4 }
  0x24   : > { %s163_s4 = sand.u32 1, %s2069_s17   ;;  %s3040_s11 = smov (%p34_p7, %s3038_s11), 0 }
  0x25   : > { %2988 = sst [smem:[#allocation17_spill]] %s3040_s11  ;;  %s1498_s5 = sshll.u32 %s163_s4, 8 }
  0x26   : > { %s36_s6 = ssub.s32 %s2085_s21, %s3040_s11  ;;  %s1538_s8 = sshll.u32 %s2085_s21, 8 }
  0x27   : > { %p37_p9 = scmp.eq.s32.totalorder %s36_s6, 0  ;;  %s106_s7 = sor.u32 %s105_s24, %s36_s6 }
  0x28   : > { %p107_p12 = scmp.eq.s32.totalorder %s106_s7, 0  ;;  %s172_s28 = scalar_lea.hbm %s2946_s0, %s1538_s8 }
  0x29   : > { %s2238_s9 = scalar_select %p37_p9, %s2069_s17, %s39_s15  }
  0x2a   : > { %s2241_s1 = scalar_select %p107_p12, %s2057_s14, %s109_s30  }
  0x2b   : > { %s167_s12 = scalar_lea.vmem [#allocation3], %s1498_s5  ;;  %s173_s27 = sshll.u32 %s172_s28, 4  ;;  %s174_s27 = int_to_ptr.hbm [resolvable:$true] %s173_s27 }
  0x2c   : > { %s175_s3 = sshll.u32 %s167_s12, 4  ;;  %p1555_p13 = pnand %p1563_p8, %p2223_p5  ;;  %s176_s3 = int_to_ptr.vmem [resolvable:$true] %s175_s3 }
  0x2d   : > { %s164_s11 = scalar_lea.sflag [#allocation4], %s163_s4  ;;  %s2989_s24 = smov 8  }
  0x2e   : > { %s2990_s6 = smov 128   ;;  %187 = sbr.rel (%p2200_p11) target bundleno = 656 (0x290), region = 32 }
  0x2f   : > { %1557 = dma.hbm_to_vmem [thread:$0]  (!%p1555_p13), %s174_s27, 4096, %s176_s3, %s164_s11, %s2990_s6, %s2990_s6, %s2989_s24  }
  0x33   : > { %s189_s20 = sand.u32 1, %s2065_s16  }
  0x34   : > { %s2256_s8 = sshll.u32 %s189_s20, 8  ;;  %s190_s12 = scalar_lea.sflag [#allocation4], %s189_s20 }
  0x35   : > { %s193_s28 = scalar_lea.vmem [#allocation3], %s2256_s8 }
  0x36   : > { %2036 = dma.done.wait (%p2184_p4), %s190_s12, 4096  }
  0x37   : > { %2038 = vsyncadd (%p2184_p4), %s190_s12, 4294963200 }
  0x38   : > { %2040 = dma.done.wait (%p2176_p1), [#allocation7], 4608  }
  0x39   : > { %2042 = vsyncadd (%p2176_p1), [#allocation7], 4294962688  ;;  %vm224_vm0 = vcmask 261120   ;;  %s219_s3 = sand.u32 1, %s2053_s13   ;;  %v2094_v0 = vmov 0.0   ;;  %s1505_s29 = sshll.u32 %s2073_s18, 3 }
  0x3a   : > { %229 = vst.msk [vmem:[#allocation2 + $0x18] sm:$0xff] %vm224_vm0, %v2094_v0  ;;  %s2271_s27 = sshll.u32 %s219_s3, 7  ;;  %vm227_vm1 = vcmask 254976   ;;  %s1539_s25 = sshll.u32 %s2073_s18, 7 }
  0x3b   : > { %225 = vst.msk [vmem:[#allocation2] sm:$0xff] %vm224_vm0, %v2094_v0  ;;  %s2297_s26 = scalar_lea.vmem %s193_s28, %s1539_s25 [#allocation3]  ;;  %s2389_s10 = scalar_lea.vmem [#allocation8], %s2271_s27 }
  0x3c   : > { %226 = vst.msk [vmem:[#allocation2 + $0x8] sm:$0xff] %vm224_vm0, %v2094_v0  ;;  %v2303_v1 = vld [vmem:[%s2297_s26] sm:$0xff]  ;;  %v2307_v2 = vld [vmem:[%s2297_s26 + $0x8] sm:$0xff]  ;;  %v2311_v3 = vld [vmem:[%s2297_s26 + $0x10] sm:$0xff]  ;;  %p1507_p1 = scmp.le.s32.totalorder %s2073_s18, 0 }
  0x3d   : > { %230 = vst.msk [vmem:[#allocation2 + $0x20] sm:$0xff] %vm224_vm0, %v2094_v0  ;;  %v274_v4 = vmax.f32 %v2303_v1, 0.0  ;;  %v2316_v5 = vld [vmem:[%s2297_s26 + $0x18] sm:$0xff]  ;;  %v275_v6 = vmax.f32 %v2307_v2, 0.0  ;;  %v2321_v7 = vld [vmem:[%s2297_s26 + $0x20] sm:$0xff]  ;;  %v276_v8 = vmax.f32 %v2311_v3, 0.0 }
  0x3e   : > { %232 = vst.msk [vmem:[#allocation2 + $0x30] sm:$0xff] %vm224_vm0, %v2094_v0  ;;  %v2326_v9 = vld [vmem:[%s2297_s26 + $0x28] sm:$0xff]  ;;  %v277_v10 = vmax.f32 %v2316_v5, 0.0  ;;  %v2331_v11 = vld [vmem:[%s2297_s26 + $0x30] sm:$0xff]  ;;  %v278_v12 = vmax.f32 %v2321_v7, 0.0  ;;  %v2336_v13 = vld [vmem:[%s2297_s26 + $0x38] sm:$0xff] }
  0x3f   : > { %233 = vst.msk [vmem:[#allocation2 + $0x38] sm:$0xff] %vm224_vm0, %v2094_v0  ;;  %v279_v14 = vmax.f32 %v2326_v9, 0.0  ;;  %v2341_v15 = vld [vmem:[%s2297_s26 + $0x40] sm:$0xff]  ;;  %v280_v16 = vmax.f32 %v2331_v11, 0.0  ;;  %v2346_v17 = vld [vmem:[%s2297_s26 + $0x48] sm:$0xff]  ;;  %v281_v18 = vmax.f32 %v2336_v13, 0.0 }
  0x40   : > { %235 = vst.msk [vmem:[#allocation2 + $0x48] sm:$0xff] %vm224_vm0, %v2094_v0  ;;  %v2351_v19 = vld [vmem:[%s2297_s26 + $0x50] sm:$0xff]  ;;  %v282_v20 = vmax.f32 %v2341_v15, 0.0  ;;  %v2356_v21 = vld [vmem:[%s2297_s26 + $0x58] sm:$0xff]  ;;  %v283_v22 = vmax.f32 %v2346_v17, 0.0  ;;  %v2361_v23 = vld [vmem:[%s2297_s26 + $0x60] sm:$0xff] }
  0x41   : > { %236 = vst.msk [vmem:[#allocation2 + $0x50] sm:$0xff] %vm224_vm0, %v2094_v0  ;;  %v284_v24 = vmax.f32 %v2351_v19, 0.0  ;;  %v2366_v25 = vld [vmem:[%s2297_s26 + $0x68] sm:$0xff]  ;;  %v285_v26 = vmax.f32 %v2356_v21, 0.0  ;;  %v2371_v27 = vld [vmem:[%s2297_s26 + $0x70] sm:$0xff]  ;;  %v286_v28 = vmax.f32 %v2361_v23, 0.0 }
  0x42   : > { %238 = vst.msk [vmem:[#allocation2 + $0x60] sm:$0xff] %vm224_vm0, %v2094_v0  ;;  %v2376_v29 = vld [vmem:[%s2297_s26 + $0x78] sm:$0xff]  ;;  %v287_v30 = vmax.f32 %v2366_v25, 0.0  ;;  %v288_v31 = vmax.f32 %v2371_v27, 0.0  ;;  %s1508_s11 = sadd.s32 (!%p1507_p1), 4294967295, %s1505_s29 }
  0x43   : > { %239 = vst.msk [vmem:[#allocation2 + $0x68] sm:$0xff] %vm224_vm0, %v2094_v0  ;;  %v289_v32 = vmax.f32 %v2376_v29, 0.0  ;;  %s1509_s15 = sshll.u32 (!%p1507_p1), %s1508_s11, 4 }
  0x44   : > { %241 = vst.msk [vmem:[#allocation2 + $0x78] sm:$0xff] %vm224_vm0, %v2094_v0  ;;  %s313_s23 = scalar_lea.vmem (!%p1507_p1), %s193_s28, %s1509_s15 [#allocation3] }
  0x45   : > { %242 = vst.msk [vmem:[#allocation2 + $0x80] sm:$0xff] %vm224_vm0, %v2094_v0 }
  0x46   : > { %244 = vst.msk [vmem:[#allocation2 + $0x90] sm:$0xff] %vm224_vm0, %v2094_v0 }
  0x47   : > { %245 = vst.msk [vmem:[#allocation2 + $0x98] sm:$0xff] %vm224_vm0, %v2094_v0 }
  0x48   : > { %247 = vst.msk [vmem:[#allocation2 + $0xa8] sm:$0xff] %vm224_vm0, %v2094_v0 }
  0x49   : > { %248 = vst.msk [vmem:[#allocation2 + $0xb0] sm:$0xff] %vm224_vm0, %v2094_v0 }
  0x4a   : > { %250 = vst.msk [vmem:[#allocation2 + $0xc0] sm:$0xff] %vm224_vm0, %v2094_v0 }
  0x4b   : > { %251 = vst.msk [vmem:[#allocation2 + $0xc8] sm:$0xff] %vm224_vm0, %v2094_v0 }
  0x4c   : > { %253 = vst.msk [vmem:[#allocation2 + $0xd8] sm:$0xff] %vm224_vm0, %v2094_v0 }
  0x4d   : > { %254 = vst.msk [vmem:[#allocation2 + $0xe0] sm:$0xff] %vm224_vm0, %v2094_v0 }
  0x4e   : > { %231 = vst.msk [vmem:[#allocation2 + $0x28] sm:$0x3] %vm227_vm1, %v2094_v0 }
  0x4f   : > { %228 = vst.msk [vmem:[#allocation2 + $0x10] sm:$0x3] %vm227_vm1, %v2094_v0 }
  0x50   : > { %234 = vst.msk [vmem:[#allocation2 + $0x40] sm:$0x3] %vm227_vm1, %v2094_v0 }
  0x51   : > { %237 = vst.msk [vmem:[#allocation2 + $0x58] sm:$0x3] %vm227_vm1, %v2094_v0 }
  0x52   : > { %240 = vst.msk [vmem:[#allocation2 + $0x70] sm:$0x3] %vm227_vm1, %v2094_v0 }
  0x53   : > { %243 = vst.msk [vmem:[#allocation2 + $0x88] sm:$0x3] %vm227_vm1, %v2094_v0 }
  0x54   : > { %2991 = vst [vmem:[#allocation18_spill] sm:$0xff] %v2311_v3 }
  0x55   : > { %246 = vst.msk [vmem:[#allocation2 + $0xa0] sm:$0x3] %vm227_vm1, %v2094_v0 }
  0x56   : > { %2992 = vst [vmem:[#allocation19_spill] sm:$0xff] %v2316_v5 }
  0x57   : > { %249 = vst.msk [vmem:[#allocation2 + $0xb8] sm:$0x3] %vm227_vm1, %v2094_v0 }
  0x58   : > { %2993 = vst [vmem:[#allocation20_spill] sm:$0xff] %v2321_v7 }
  0x59   : > { %252 = vst.msk [vmem:[#allocation2 + $0xd0] sm:$0x3] %vm227_vm1, %v2094_v0 }
  0x5a   : > { %2994 = vst [vmem:[#allocation21_spill] sm:$0xff] %v2326_v9 }
  0x5b   : > { %255 = vst.msk [vmem:[#allocation2 + $0xe8] sm:$0x3] %vm227_vm1, %v2094_v0 }
  0x5c   : > { %2995 = vst [vmem:[#allocation22_spill] sm:$0xff] %v2331_v11 }
  0x5d   : > { %291 = vst.msk [vmem:[#allocation2 + $0x19] sm:$0xff] %vm224_vm0, %v274_v4 }
  0x5e   : > { %2996 = vst [vmem:[#allocation23_spill] sm:$0xff] %v2336_v13 }
  0x5f   : > { %292 = vst.msk [vmem:[#allocation2 + $0x21] sm:$0xff] %vm224_vm0, %v275_v6 }
  0x60   : > { %2997 = vst [vmem:[#allocation24_spill] sm:$0xff] %v2341_v15 }
  0x61   : > { %293 = vst.msk [vmem:[#allocation2 + $0x31] sm:$0xff] %vm224_vm0, %v276_v8 }
  0x62   : > { %2998 = vst [vmem:[#allocation25_spill] sm:$0xff] %v2346_v17 }
  0x63   : > { %294 = vst.msk [vmem:[#allocation2 + $0x39] sm:$0xff] %vm224_vm0, %v277_v10 }
  0x64   : > { %2999 = vst [vmem:[#allocation26_spill] sm:$0xff] %v2351_v19 }
  0x65   : > { %295 = vst.msk [vmem:[#allocation2 + $0x49] sm:$0xff] %vm224_vm0, %v278_v12 }
  0x66   : > { %3000 = vst [vmem:[#allocation27_spill] sm:$0xff] %v2356_v21 }
  0x67   : > { %296 = vst.msk [vmem:[#allocation2 + $0x51] sm:$0xff] %vm224_vm0, %v279_v14 }
  0x68   : > { %3001 = vst [vmem:[#allocation28_spill] sm:$0xff] %v2361_v23 }
  0x69   : > { %297 = vst.msk [vmem:[#allocation2 + $0x61] sm:$0xff] %vm224_vm0, %v280_v16 }
  0x6a   : > { %3002 = vst [vmem:[#allocation29_spill] sm:$0xff] %v2366_v25 }
  0x6b   : > { %298 = vst.msk [vmem:[#allocation2 + $0x69] sm:$0xff] %vm224_vm0, %v281_v18 }
  0x6c   : > { %3003 = vst [vmem:[#allocation30_spill] sm:$0xff] %v2371_v27 }
  0x6d   : > { %299 = vst.msk [vmem:[#allocation2 + $0x79] sm:$0xff] %vm224_vm0, %v282_v20 }
  0x6e   : > { %3004 = vst [vmem:[#allocation31_spill] sm:$0xff] %v2376_v29 }
  0x6f   : > { %300 = vst.msk [vmem:[#allocation2 + $0x81] sm:$0xff] %vm224_vm0, %v283_v22 }
  0x70   : > { %301 = vst.msk [vmem:[#allocation2 + $0x91] sm:$0xff] %vm224_vm0, %v284_v24 }
  0x71   : > { %302 = vst.msk [vmem:[#allocation2 + $0x99] sm:$0xff] %vm224_vm0, %v285_v26  ;;  %310 = sbr.rel (%p1507_p1) target bundleno = 123 (0x7b), region = 44 }
  0x72   : > { %303 = vst.msk [vmem:[#allocation2 + $0xa9] sm:$0xff] %vm224_vm0, %v286_v28 }
  0x73   : > { %304 = vst.msk [vmem:[#allocation2 + $0xb1] sm:$0xff] %vm224_vm0, %v287_v30 }
  0x74   : > { %305 = vst.msk [vmem:[#allocation2 + $0xc1] sm:$0xff] %vm224_vm0, %v288_v31 }
  0x75   : > { %306 = vst.msk [vmem:[#allocation2 + $0xc9] sm:$0xff] %vm224_vm0, %v289_v32 }
  0x76   : > { %v314_v33 = vld [vmem:[%s313_s23] sm:$0xff]  ;;  %v315_v34 = vld [vmem:[%s313_s23 + $0x8] sm:$0xff] }
  0x77   : > { %v316_v35 = vmax.f32 %v314_v33, 0.0  ;;  %v317_v36 = vmax.f32 %v315_v34, 0.0 }
  0x79   : > { %318 = vst.msk [vmem:[#allocation2 + $0x1] sm:$0xff] %vm224_vm0, %v316_v35 }
  0x7a   : > { %319 = vst.msk [vmem:[#allocation2 + $0x9] sm:$0xff] %vm224_vm0, %v317_v36 }
  0x7b PF: > { %p1510_p4 = scmp.ge.s32.totalorder %s2073_s18, 1 }
  0x7d   : > { %323 = sbr.rel (%p1510_p4) target bundleno = 135 (0x87), region = 48 }
  0x82   : > { %v1513_v37 = vld [vmem:[%s2297_s26 + $0x80] sm:$0xff]  ;;  %v1514_v38 = vld [vmem:[%s2297_s26 + $0x88] sm:$0xff] }
  0x83   : > { %v329_v39 = vmax.f32 %v1513_v37, 0.0  ;;  %v330_v40 = vmax.f32 %v1514_v38, 0.0 }
  0x85   : > { %332 = vst.msk [vmem:[#allocation2 + $0xd9] sm:$0xff] %vm224_vm0, %v329_v39 }
  0x86   : > { %333 = vst.msk [vmem:[#allocation2 + $0xe1] sm:$0xff] %vm224_vm0, %v330_v40 }
  0x87 PF: > { %v2403_v41 = vld [vmem:[#allocation2 + $0x18] sm:$0xff]  ;;  %v350_v43 = vld [vmem:[#allocation2 + $0x1] sm:$0xff]  ;;  %s2095_s30 = smov 96   ;;  %v367_v47 = vld [vmem:[#allocation2 + $0xa] sm:$0xff]  ;;  %s2096_s4 = smov 32   ;;  %vm879_vm2 = vcmask 523264  }
  0x88   : > { %v2405_v42 = vld [vmem:[#allocation2 + $0x31] sm:$0xff]  ;;  %v414_v45 = vld [vmem:[#allocation2 + $0x1a] sm:$0xff]  ;;  %v351_v48 = vld [vmem:[#allocation2 + $0x9] sm:$0xff]  ;;  %s2097_s5 = smov 64   ;;  %vm896_vm3 = vcmask 785408   ;;  %s3019_s12 = sld [smem:[#allocation33_spill]] }
  0x89   : > { %v1673_v44 = vpack.i.bf16 %v2405_v42, %v2403_v41  ;;  %v1663_v46 = vpack.i.bf16 %v414_v45, %v350_v43  ;;  %v415_v49 = vld [vmem:[#allocation2 + $0x22] sm:$0xff]  ;;  %v2411_v50 = vld [vmem:[#allocation2 + $0x38] sm:$0xff]  ;;  %v2413_v52 = vld [vmem:[#allocation2 + $0x30] sm:$0xff]  ;;  %s1385_s29 = sshll.u32 %s2389_s10, 4  ;;  %s1386_s29 = int_to_ptr.vmem [resolvable:$true] %s1385_s29 }
  0x8a   : > { %v366_v51 = vld [vmem:[#allocation2 + $0x2] sm:$0xff]  ;;  %v1683_v53 = vpack.i.bf16 %v2411_v50, %v367_v47  ;;  %v1678_v54 = vpack.i.bf16 %v415_v49, %v351_v48  ;;  %v2420_v57 = vld [vmem:[#allocation2 + $0x39] sm:$0xff]  ;;  %v2442_v6 = vld [vmem:[#allocation2 + $0x50] sm:$0xff] }
  0x8b   : > { %1674 = vrot.lane.b32.xlu1 %v1673_v44, %s2095_s30  ;;  %1664 = vrot.lane.b32.xlu0 %v1663_v46, %s2096_s4  ;;  %v1668_v55 = vpack.i.bf16 %v2413_v52, %v366_v51  ;;  %v2418_v56 = vld [vmem:[#allocation2 + $0x20] sm:$0xff]  ;;  %v2426_v59 = vld [vmem:[#allocation2 + $0x48] sm:$0xff]  ;;  %v2430_v61 = vld [vmem:[#allocation2 + $0x32] sm:$0xff]  ;;  %v1713_v12 = vpack.i.bf16 %v2442_v6, %v415_v49 }
  0x8c   : > { %1684 = vrot.lane.b32.xlu2 %v1683_v53, %s2097_s5  ;;  %v1688_v58 = vpack.i.bf16 %v2420_v57, %v2418_v56  ;;  %v2428_v60 = vld [vmem:[#allocation2 + $0x19] sm:$0xff]  ;;  %v1698_v62 = vpack.i.bf16 %v2426_v59, %v414_v45  ;;  %v2436_v0 = vld [vmem:[#allocation2 + $0x49] sm:$0xff]  ;;  %v2444_v8 = vld [vmem:[#allocation2 + $0x21] sm:$0xff] }
  0x8d   : > { %v1693_v63 = vpack.i.bf16 %v2430_v61, %v2428_v60  ;;  %v1703_v4 = vpack.i.bf16 %v2436_v0, %v2413_v52  ;;  %v2446_v10 = vld [vmem:[#allocation2 + $0x3a] sm:$0xff]  ;;  %v2452_v16 = vld [vmem:[#allocation2 + $0x51] sm:$0xff]  ;;  %v2473_v31 = vld [vmem:[#allocation2 + $0x68] sm:$0xff] }
  0x8e   : > { %v1708_v14 = vpack.i.bf16 %v2446_v10, %v2444_v8  ;;  %v1718_v18 = vpack.i.bf16 %v2452_v16, %v2411_v50  ;;  %v2458_v20 = vld [vmem:[#allocation2 + $0x60] sm:$0xff]  ;;  %v2460_v22 = vld [vmem:[#allocation2 + $0x4a] sm:$0xff]  ;;  %v2475_v32 = vld [vmem:[#allocation2 + $0x52] sm:$0xff]  ;;  %v1743_v33 = vpack.i.bf16 %v2473_v31, %v2446_v10  ;;  %s3020_s28 = smov %s3019_s12 }
  0x8f   : > { %v1728_v24 = vpack.i.bf16 %v2458_v20, %v2430_v61  ;;  %v1723_v26 = vpack.i.bf16 %v2460_v22, %v2405_v42  ;;  %v2467_v28 = vld [vmem:[#allocation2 + $0x61] sm:$0xff]  ;;  %v1738_v34 = vpack.i.bf16 %v2475_v32, %v2420_v57  ;;  %v2482_v35 = vld [vmem:[#allocation2 + $0x69] sm:$0xff]  ;;  %v2488_v37 = vld [vmem:[#allocation2 + $0x78] sm:$0xff]  ;;  %s1983_s23 = scalar_lea.hbm %s3020_s28, 512 }
  0x90   : > { %v1733_v30 = vpack.i.bf16 %v2467_v28, %v2426_v59  ;;  %v1748_v36 = vpack.i.bf16 %v2482_v35, %v2442_v6  ;;  %v2490_v38 = vld [vmem:[#allocation2 + $0x62] sm:$0xff]  ;;  %v1758_v39 = vpack.i.bf16 %v2488_v37, %v2460_v22  ;;  %v2497_v43 = vld [vmem:[#allocation2 + $0x79] sm:$0xff]  ;;  %v2505_v46 = vld [vmem:[#allocation2 + $0x6a] sm:$0xff] }
  0x91   : > { %v1753_v40 = vpack.i.bf16 %v2490_v38, %v2436_v0  ;;  %v1763_v44 = vpack.i.bf16 %v2497_v43, %v2458_v20  ;;  %v2503_v45 = vld [vmem:[#allocation2 + $0x80] sm:$0xff]  ;;  %v1768_v48 = vpack.i.bf16 %v2505_v46, %v2452_v16  ;;  %v2518_v53 = vld [vmem:[#allocation2 + $0x90] sm:$0xff]  ;;  %v994_v29 = vld [vmem:[#allocation6 + $0x108] sm:$0xff] }
  0x92   : > { %v1773_v47 = vpack.i.bf16 %v2503_v45, %v2475_v32  ;;  %v2512_v49 = vld [vmem:[#allocation2 + $0x81] sm:$0xff]  ;;  %v977_v23 = vld [vmem:[#allocation6 + $0x80] sm:$0xff] }
  0x93   : > { %1679 = vrot.lane.b32.xlu1 %v1678_v54, %s2096_s4  ;;  %1669 = vrot.lane.b32.xlu0 %v1668_v55, %s2097_s5  ;;  %v1778_v51 = vpack.i.bf16 %v2512_v49, %v2473_v31  ;;  %v976_v54 = vld [vmem:[#allocation6 + $0x78] sm:$0xff]  ;;  %v963_v27 = vld [vmem:[#allocation6 + $0x10] sm:$0xff] }
  0x94   : > { %1689 = vrot.lane.b32.xlu2 %v1688_v58, %s2095_s30  ;;  %v992_v55 = vld [vmem:[#allocation6 + $0xf8] sm:$0xff]  ;;  %v2520_v58 = vld [vmem:[#allocation2 + $0x7a] sm:$0xff]  ;;  %1045 = vmatpush.msra.mxu0 %v976_v54 }
  0x95   : > { %1110 = vmatpush.msra.mxu1 %v992_v55  ;;  %v986_v54 = vld [vmem:[#allocation6 + $0xc8] sm:$0xff]  ;;  %v443_v25 = vld [vmem:[#allocation2 + $0xc0] sm:$0xff]  ;;  %v2622_v17 = vld [vmem:[#allocation2 + $0xca] sm:$0xff] }
  0x96   : > { %v334_v13 = vld [vmem:[#allocation2] sm:$0xff] }
  0x9b   : > { %1699 = vrot.lane.b32.xlu1 %v1698_v62, %s2097_s5  ;;  %1694 = vrot.lane.b32.xlu0 %v1693_v63, %s2096_s4  ;;  %v975_v62 = vld [vmem:[#allocation6 + $0x70] sm:$0xff] }
  0x9c   : > { %1704 = vrot.lane.b32.xlu2 %v1703_v4, %s2095_s30  ;;  %v991_v63 = vld [vmem:[#allocation6 + $0xf0] sm:$0xff]  ;;  %v974_v4 = vld [vmem:[#allocation6 + $0x68] sm:$0xff]  ;;  %1046 = vmatpush.msra.mxu0 %v975_v62 }
  0x9d   : > { %1111 = vmatpush.msra.mxu1 %v991_v63  ;;  %v2542_v62 = vld [vmem:[#allocation2 + $0x99] sm:$0xff]  ;;  %v969_v63 = vld [vmem:[#allocation6 + $0x40] sm:$0xff] }
  0x9e   : > { %1047 = vmatpush.msra.mxu0 %v974_v4  ;;  %v985_v4 = vld [vmem:[#allocation6 + $0xc0] sm:$0xff] }
  0xa3   : > { %1714 = vrot.lane.b32.xlu1 %v1713_v12, %s2097_s5  ;;  %1709 = vrot.lane.b32.xlu0 %v1708_v14, %s2096_s4  ;;  %v1788_v12 = vpack.i.bf16 %v2518_v53, %v2490_v38  ;;  %v990_v14 = vld [vmem:[#allocation6 + $0xe8] sm:$0xff] }
  0xa4   : > { %1719 = vrot.lane.b32.xlu2 %v1718_v18, %s2095_s30  ;;  %v1783_v18 = vpack.i.bf16 %v2520_v58, %v2467_v28  ;;  %1112 = vmatpush.msra.mxu1 %v990_v14  ;;  %v2548_v14 = vld [vmem:[#allocation2 + $0xa8] sm:$0xff] }
  0xab   : > { %1729 = vrot.lane.b32.xlu1 %v1728_v24, %s2097_s5  ;;  %1724 = vrot.lane.b32.xlu0 %v1723_v26, %s2096_s4  ;;  %v2527_v24 = vld [vmem:[#allocation2 + $0x91] sm:$0xff] }
  0xac   : > { %1734 = vrot.lane.b32.xlu2 %v1733_v30, %s2095_s30  ;;  %v973_v26 = vld [vmem:[#allocation6 + $0x60] sm:$0xff] }
  0xad   : > { %v989_v30 = vld [vmem:[#allocation6 + $0xe0] sm:$0xff]  ;;  %1048 = vmatpush.msra.mxu0 %v973_v26  ;;  %v984_v26 = vld [vmem:[#allocation6 + $0xb8] sm:$0xff] }
  0xae   : > { %1113 = vmatpush.msra.mxu1 %v989_v30  ;;  %v2550_v30 = vld [vmem:[#allocation2 + $0x92] sm:$0xff] }
  0xb3   : > { %1744 = vrot.lane.b32.xlu1 %v1743_v33, %s2097_s5  ;;  %1739 = vrot.lane.b32.xlu0 %v1738_v34, %s2096_s4  ;;  %v1793_v33 = vpack.i.bf16 %v2527_v24, %v2488_v37  ;;  %v2533_v34 = vld [vmem:[#allocation2 + $0x98] sm:$0xff] }
  0xb4   : > { %1749 = vrot.lane.b32.xlu2 %v1748_v36, %s2095_s30  ;;  %v972_v36 = vld [vmem:[#allocation6 + $0x58] sm:$0xff] }
  0xb5   : > { %1049 = vmatpush.msra.mxu0 %v972_v36  ;;  %v983_v36 = vld [vmem:[#allocation6 + $0xb0] sm:$0xff] }
  0xbb   : > { %1759 = vrot.lane.b32.xlu1 %v1758_v39, %s2097_s5  ;;  %1754 = vrot.lane.b32.xlu0 %v1753_v40, %s2096_s4  ;;  %v988_v39 = vld [vmem:[#allocation6 + $0xd8] sm:$0xff] }
  0xbc   : > { %1764 = vrot.lane.b32.xlu2 %v1763_v44, %s2095_s30  ;;  %v2535_v40 = vld [vmem:[#allocation2 + $0x82] sm:$0xff]  ;;  %1114 = vmatpush.msra.mxu1 %v988_v39  ;;  %v1818_v39 = vpack.i.bf16 %v2548_v14, %v2520_v58 }
  0xbd   : > { %v971_v44 = vld [vmem:[#allocation6 + $0x50] sm:$0xff]  ;;  %v1798_v55 = vpack.i.bf16 %v2535_v40, %v2482_v35 }
  0xbe   : > { %1050 = vmatpush.msra.mxu0 %v971_v44  ;;  %v1813_v44 = vpack.i.bf16 %v2550_v30, %v2497_v43 }
  0xc3   : > { %1774 = vrot.lane.b32.xlu1 %v1773_v47, %s2097_s5  ;;  %1769 = vrot.lane.b32.xlu0 %v1768_v48, %s2096_s4  ;;  %v987_v47 = vld [vmem:[#allocation6 + $0xd0] sm:$0xff]  ;;  %v970_v48 = vld [vmem:[#allocation6 + $0x48] sm:$0xff] }
  0xc4   : > { %1779 = vrot.lane.b32.xlu2 %v1778_v51, %s2095_s30  ;;  %v1803_v51 = vpack.i.bf16 %v2533_v34, %v2505_v46  ;;  %1115 = vmatpush.msra.mxu1 %v987_v47  ;;  %v2557_v47 = vld [vmem:[#allocation2 + $0xa9] sm:$0xff] }
  0xc5   : > { %1051 = vmatpush.msra.mxu0 %v970_v48  ;;  %v1823_v48 = vpack.i.bf16 %v2557_v47, %v2518_v53 }
  0xc6   : > { %1116 = vmatpush.msra.mxu1 %v986_v54  ;;  %v2565_v54 = vld [vmem:[#allocation2 + $0x9a] sm:$0xff] }
  0xc7   : > { %1052 = vmatpush.msra.mxu0 %v969_v63  ;;  %v966_v63 = vld [vmem:[#allocation6 + $0x28] sm:$0xff] }
  0xc8   : > { %1117 = vmatpush.msra.mxu1 %v985_v4  ;;  %v982_v4 = vld [vmem:[#allocation6 + $0xa8] sm:$0xff] }
  0xca   : > { %1118 = vmatpush.msra.mxu1 %v984_v26  ;;  %v965_v26 = vld [vmem:[#allocation6 + $0x20] sm:$0xff] }
  0xcb   : > { %1789 = vrot.lane.b32.xlu1 %v1788_v12, %s2097_s5  ;;  %1784 = vrot.lane.b32.xlu0 %v1783_v18, %s2096_s4  ;;  %v1808_v12 = vpack.i.bf16 %v2542_v62, %v2503_v45  ;;  %v968_v18 = vld [vmem:[#allocation6 + $0x38] sm:$0xff] }
  0xcc   : > { %1794 = vrot.lane.b32.xlu2 %v1793_v33, %s2095_s30  ;;  %1053 = vmatpush.msra.mxu0 %v968_v18  ;;  %v967_v33 = vld [vmem:[#allocation6 + $0x30] sm:$0xff]  ;;  %v1828_v18 = vpack.i.bf16 %v2565_v54, %v2512_v49 }
  0xcd   : > { %1119 = vmatpush.msra.mxu1 %v983_v36  ;;  %v995_v36 = vld [vmem:[#allocation6 + $0x110] sm:$0xff] }
  0xce   : > { %1054 = vmatpush.msra.mxu0 %v967_v33  ;;  %v981_v33 = vld [vmem:[#allocation6 + $0xa0] sm:$0xff] }
  0xcf   : > { %1120 = vmatpush.msra.mxu1 %v982_v4  ;;  %v979_v4 = vld [vmem:[#allocation6 + $0x90] sm:$0xff] }
  0xd0   : > { %1055 = vmatpush.msra.mxu0 %v966_v63 }
  0xd1   : > { %1121 = vmatpush.msra.mxu1 %v981_v33  ;;  %v962_v33 = vld [vmem:[#allocation6 + $0x8] sm:$0xff] }
  0xd2   : > { %1056 = vmatpush.msra.mxu0 %v965_v26  ;;  %v993_v26 = vld [vmem:[#allocation6 + $0x100] sm:$0xff] }
  0xd3   : > { %1804 = vrot.lane.b32.xlu1 %v1803_v51, %s2097_s5  ;;  %1799 = vrot.lane.b32.xlu0 %v1798_v55, %s2096_s4  ;;  %v2563_v51 = vld [vmem:[#allocation2 + $0xb0] sm:$0xff] }
  0xd4   : > { %1809 = vrot.lane.b32.xlu2 %v1808_v12, %s2095_s30  ;;  %v1833_v55 = vpack.i.bf16 %v2563_v51, %v2535_v40  ;;  %v996_v12 = vld [vmem:[#allocation6 + $0x118] sm:$0xff] }
  0xd5   : > { %1187 = vmatpush.msra.mxu2 %v996_v12  ;;  %v2578_v12 = vld [vmem:[#allocation2 + $0xaa] sm:$0xff] }
  0xd7   : > { %1188 = vmatpush.msra.mxu2 %v995_v36  ;;  %v978_v36 = vld [vmem:[#allocation6 + $0x88] sm:$0xff] }
  0xd9   : > { %1189 = vmatpush.msra.mxu2 %v994_v29 }
  0xdb   : > { %1819 = vrot.lane.b32.xlu1 %v1818_v39, %s2097_s5  ;;  %1814 = vrot.lane.b32.xlu0 %v1813_v44, %s2096_s4  ;;  %v964_v39 = vld [vmem:[#allocation6 + $0x18] sm:$0xff] }
  0xdc   : > { %1824 = vrot.lane.b32.xlu2 %v1823_v48, %s2095_s30  ;;  %v980_v44 = vld [vmem:[#allocation6 + $0x98] sm:$0xff]  ;;  %v2573_v48 = vld [vmem:[#allocation2 + $0xb1] sm:$0xff]  ;;  %1057 = vmatpush.msra.mxu0 %v964_v39 }
  0xdd   : > { %v1838_v63 = vpack.i.bf16 %v2573_v48, %v2533_v34  ;;  %1122 = vmatpush.msra.mxu1 %v980_v44  ;;  %1190 = vmatpush.msra.mxu2 %v993_v26  ;;  %v961_v39 = vld [vmem:[#allocation6] sm:$0xff]  ;;  %v444_v44 = vld [vmem:[#allocation2 + $0xc8] sm:$0xff] }
  0xde   : > { %1058 = vmatpush.msra.mxu0 %v963_v27  ;;  %1515 = vmatmul.msk.f32.vlgmr.msra.gmra.mxu2 %vm224_vm0, %v2430_v61  ;;  %v2588_v27 = vld [vmem:[#allocation2 + $0xc1] sm:$0xff] }
  0xdf   : > { %1123 = vmatpush.msra.mxu1 %v979_v4  ;;  %v1853_v29 = vpack.i.bf16 %v2588_v27, %v2548_v14  ;;  %v1863_v4 = vpack.i.bf16 %v444_v44, %v2565_v54 }
  0xe0   : > { %1059 = vmatpush.msra.mxu0 %v962_v33  ;;  %v445_v33 = vld [vmem:[#allocation2 + $0xd8] sm:$0xff] }
  0xe1   : > { %1124 = vmatpush.msra.mxu1 %v978_v36  ;;  %v2610_v36 = vld [vmem:[#allocation2 + $0xc2] sm:$0xff] }
  0xe2   : > { %1060 = vmatpush.msra.mxu0 %v961_v39  ;;  %v1873_v39 = vpack.i.bf16 %v2610_v36, %v2557_v47 }
  0xe3   : > { %1834 = vrot.lane.b32.xlu1 %v1833_v55, %s2097_s5  ;;  %1829 = vrot.lane.b32.xlu0 %v1828_v18, %s2096_s4  ;;  %v1848_v55 = vpack.i.bf16 %v443_v25, %v2550_v30  ;;  %v1843_v18 = vpack.i.bf16 %v2578_v12, %v2527_v24 }
  0xe4   : > { %1839 = vrot.lane.b32.xlu2 %v1838_v63, %s2095_s30  ;;  %1125 = vmatpush.msra.mxu1 %v977_v23  ;;  %v2594_v63 = vld [vmem:[#allocation2 + $0xb2] sm:$0xff]  ;;  %v2604_v23 = vld [vmem:[#allocation2 + $0xc9] sm:$0xff] }
  0xe5   : > { %v1858_v61 = vpack.i.bf16 %v2594_v63, %v2542_v62 }
  0xe6   : > { %v2584_v21 = vpop.permute.xlu2 %1684  ;;  %1516 = vmatmul.msk.f32.gmra.mxu2 %vm224_vm0, %v2446_v10 }
  0xeb   : > { %1849 = vrot.lane.b32.xlu1 %v1848_v55, %s2097_s5  ;;  %1844 = vrot.lane.b32.xlu0 %v1843_v18, %s2096_s4  ;;  %v1868_v55 = vpack.i.bf16 %v2604_v23, %v2563_v51  ;;  %v1878_v18 = vpack.i.bf16 %v445_v33, %v2578_v12 }
  0xec   : > { %1854 = vrot.lane.b32.xlu2 %v1853_v29, %s2095_s30  ;;  %v461_v29 = vld [vmem:[#allocation2 + $0xd9] sm:$0xff] }
  0xee   : > { %v2600_v26 = vpop.permute.xlu2 %1689  ;;  %1517 = vmatmul.msk.f32.gmra.mxu2 %vm224_vm0, %v2460_v22  ;;  %v1888_v22 = vpack.i.bf16 %v2622_v17, %v2573_v48 }
  0xf3   : > { %1864 = vrot.lane.b32.xlu1 %v1863_v4, %s2097_s5  ;;  %1859 = vrot.lane.b32.xlu0 %v1858_v61, %s2096_s4  ;;  %v1883_v4 = vpack.i.bf16 %v461_v29, %v443_v25  ;;  %v446_v61 = vld [vmem:[#allocation2 + $0xe0] sm:$0xff] }
  0xf4   : > { %1869 = vrot.lane.b32.xlu2 %v1868_v55, %s2095_s30  ;;  %v1893_v55 = vpack.i.bf16 %v446_v61, %v2594_v63  ;;  %v462_v25 = vld [vmem:[#allocation2 + $0xe1] sm:$0xff] }
  0xf6   : > { %v2618_v10 = vpop.permute.xlu2 %1704  ;;  %1518 = vmatmul.msk.f32.gmra.mxu2 %vm224_vm0, %v2475_v32 }
  0xfb   : > { %1879 = vrot.lane.b32.xlu1 %v1878_v18, %s2097_s5  ;;  %1874 = vrot.lane.b32.xlu0 %v1873_v39, %s2096_s4  ;;  %v1898_v18 = vpack.i.bf16 %v462_v25, %v444_v44  ;;  %v335_v25 = vld [vmem:[#allocation2 + $0x8] sm:$0xff] }
  0xfc   : > { %1884 = vrot.lane.b32.xlu2 %v1883_v4, %s2095_s30 }
  0xfd   : > { %v1675_v19 = vpop.permute.xlu1 %1674  ;;  %v1665_v33 = vpop.permute.xlu0 %1664 }
  0xfe   : > { %v2630_v15 = vpop.permute.xlu2 %1719  ;;  %v1667_v39 = vunpack.i.h.bf16 %v1665_v33  ;;  %v1666_v29 = vunpack.i.l.bf16 %v1665_v33  ;;  %v1677_v4 = vunpack.i.h.bf16 %v1675_v19  ;;  %v1676_v9 = vunpack.i.l.bf16 %v1675_v19  ;;  %1519 = vmatmul.msk.f32.gmra.mxu2 %vm224_vm0, %v2490_v38 }
  0xff   : > { %v1692_v38 = vunpack.i.h.bf16 %v2600_v26 }
 0x100   : > { %v913_v32 = vsel %vm224_vm0, %v2428_v60, %v1667_v39  ;;  %v863_v44 = vsel %vm224_vm0, %v334_v13, %v1666_v29  ;;  %v1686_v60 = vunpack.i.l.bf16 %v2584_v21 }
 0x103   : > { %1894 = vrot.lane.b32.xlu1 %v1893_v55, %s2097_s5  ;;  %1889 = vrot.lane.b32.xlu0 %v1888_v22, %s2096_s4  ;;  %s1541_s4 = sshll.u32 %s2073_s18, 4  ;;  %s1534_s5 = sshll.u32 %s2077_s19, 5 }
 0x104   : > { %1899 = vrot.lane.b32.xlu2 %v1898_v18, %s2095_s30  ;;  %v1687_v18 = vunpack.i.h.bf16 %v2584_v21  ;;  %s1382_s7 = sadd.s32 %s1541_s4, %s1534_s5  ;;  %s1370_s18 = scalar_lea.sflag [#allocation5], %s219_s3 }
 0x105   : > { %v1680_v61 = vpop.permute.xlu1 %1679  ;;  %v1670_v11 = vpop.permute.xlu0 %1669  ;;  %s1535_s24 = sshll.u32 %s1382_s7, 3 }
 0x106   : > { %v1672_v7 = vunpack.i.h.bf16 %v1670_v11  ;;  %v1671_v5 = vunpack.i.l.bf16 %v1670_v11  ;;  %v1682_v55 = vunpack.i.h.bf16 %v1680_v61  ;;  %v1681_v33 = vunpack.i.l.bf16 %v1680_v61  ;;  %v2646_v13 = vpop.permute.xlu2 %1734  ;;  %1520 = vmatmul.msk.f32.gmra.mxu2 %vm224_vm0, %v2505_v46  ;;  %s1384_s27 = scalar_lea.hbm %s3019_s12, %s1535_s24 }
 0x107   : > { %s1387_s25 = sshll.u32 %s1384_s27, 4  ;;  %s1388_s25 = int_to_ptr.hbm [resolvable:$true] %s1387_s25 }
 0x108   : > { %v880_v22 = vsel %vm879_vm2, %v863_v44, %v1671_v5  ;;  %v929_v3 = vsel %vm879_vm2, %v913_v32, %v1672_v7  ;;  %v914_v5 = vsel %vm224_vm0, %v2444_v8, %v1682_v55  ;;  %v864_v7 = vsel %vm224_vm0, %v335_v25, %v1681_v33  ;;  %s1977_s19 = sshra.s32 %s1388_s25, 4  ;;  %s1978_s19 = int_to_ptr.hbm [resolvable:$true] %s1977_s19 }
 0x109   : > { %v897_v19 = vsel %vm896_vm3, %v880_v22, %v1676_v9  ;;  %v945_v11 = vsel %vm896_vm3, %v929_v3, %v1677_v4  ;;  %v1691_v9 = vunpack.i.l.bf16 %v2600_v26  ;;  %v881_v3 = vsel %vm879_vm2, %v864_v7, %v1686_v60  ;;  %s1979_s26 = scalar_lea.hbm %s1978_s19, 128  ;;  %p1984_p3 = scmp.lt.s32.totalorder %s1978_s19, %s3020_s28 }
 0x10a   : > { %1061 = vmatmul.f32.vlgmr.msra.gmra.mxu0 %v897_v19  ;;  %1126 = vmatmul.f32.vlgmr.msra.gmra.mxu1 %v945_v11  ;;  %v930_v61 = vsel %vm879_vm2, %v914_v5, %v1687_v18  ;;  %v1707_v25 = vunpack.i.h.bf16 %v2618_v10  ;;  %v1706_v22 = vunpack.i.l.bf16 %v2618_v10  ;;  %p1980_p11 = scmp.ne.s32.totalorder %s1978_s19, %s1979_s26  ;;  %p1985_p5 = scmp.lt.s32.totalorder %s1983_s23, %s1979_s26 }
 0x10b   : > { %v898_v8 = vsel %vm896_vm3, %v881_v3, %v1691_v9  ;;  %v946_v55 = vsel %vm896_vm3, %v930_v61, %v1692_v38  ;;  %v1721_v3 = vunpack.i.l.bf16 %v2630_v15 }
 0x10c   : > { %p1981_p0 = pnand %p1980_p11, %p2190_p6  ;;  %p1986_p7 = por %p1985_p5, %p1984_p3 }
 0x10d   : > { %v1700_v39 = vpop.permute.xlu1 %1699  ;;  %v1695_v29 = vpop.permute.xlu0 %1694 }
 0x10e   : > { %v1697_v21 = vunpack.i.h.bf16 %v1695_v29  ;;  %v1696_v4 = vunpack.i.l.bf16 %v1695_v29  ;;  %v1702_v32 = vunpack.i.h.bf16 %v1700_v39  ;;  %v1701_v44 = vunpack.i.l.bf16 %v1700_v39  ;;  %v1750_v18 = vpop.permute.xlu2 %1749  ;;  %1521 = vmatmul.msk.f32.gmra.mxu2 %vm224_vm0, %v2520_v58  ;;  %p1982_p2 = pneg %p1981_p0 }
 0x10f   : > { %v1722_v29 = vunpack.i.h.bf16 %v2630_v15 }
 0x110   : > { %v915_v33 = vsel %vm224_vm0, %v2405_v42, %v1697_v21  ;;  %v865_v26 = vsel %vm224_vm0, %v2403_v41, %v1696_v4  ;;  %p1987_p8 = pnand %p1986_p7, %p1982_p2 }
 0x111   : > { %v882_v19 = vsel %vm879_vm2, %v865_v26, %v1701_v44  ;;  %v931_v46 = vsel %vm879_vm2, %v915_v33, %v1702_v32 }
 0x112   : > { %1064 = vmatmul.f32.gmra.mxu0 %v898_v8  ;;  %1129 = vmatmul.f32.gmra.mxu1 %v946_v55  ;;  %v899_v42 = vsel %vm896_vm3, %v882_v19, %v1706_v22  ;;  %v947_v39 = vsel %vm896_vm3, %v931_v46, %v1707_v25  ;;  %v1737_v25 = vunpack.i.h.bf16 %v2646_v13  ;;  %v1736_v22 = vunpack.i.l.bf16 %v2646_v13 }
 0x115   : > { %v1715_v11 = vpop.permute.xlu1 %1714  ;;  %v1710_v60 = vpop.permute.xlu0 %1709 }
 0x116   : > { %v1712_v5 = vunpack.i.h.bf16 %v1710_v60  ;;  %v1711_v7 = vunpack.i.l.bf16 %v1710_v60  ;;  %v1717_v41 = vunpack.i.h.bf16 %v1715_v11  ;;  %v1716_v38 = vunpack.i.l.bf16 %v1715_v11  ;;  %v1765_v8 = vpop.permute.xlu2 %1764  ;;  %1522 = vmatmul.msk.f32.gmra.mxu2 %vm224_vm0, %v2535_v40 }
 0x118   : > { %v916_v10 = vsel %vm224_vm0, %v2420_v57, %v1712_v5  ;;  %v866_v9 = vsel %vm224_vm0, %v2418_v56, %v1711_v7 }
 0x119   : > { %v883_v61 = vsel %vm879_vm2, %v866_v9, %v1716_v38  ;;  %v932_v21 = vsel %vm879_vm2, %v916_v10, %v1717_v41  ;;  %v1752_v38 = vunpack.i.h.bf16 %v1750_v18  ;;  %v1751_v10 = vunpack.i.l.bf16 %v1750_v18 }
 0x11a   : > { %1067 = vmatmul.f32.gmra.mxu0 %v899_v42  ;;  %1132 = vmatmul.f32.gmra.mxu1 %v947_v39  ;;  %v900_v57 = vsel %vm896_vm3, %v883_v61, %v1721_v3  ;;  %v948_v55 = vsel %vm896_vm3, %v932_v21, %v1722_v29 }
 0x11d   : > { %v1730_v4 = vpop.permute.xlu1 %1729  ;;  %v1725_v32 = vpop.permute.xlu0 %1724 }
 0x11e   : > { %v1727_v44 = vunpack.i.h.bf16 %v1725_v32  ;;  %v1726_v58 = vunpack.i.l.bf16 %v1725_v32  ;;  %v1732_v56 = vunpack.i.h.bf16 %v1730_v4  ;;  %v1731_v33 = vunpack.i.l.bf16 %v1730_v4  ;;  %v1780_v39 = vpop.permute.xlu2 %1779  ;;  %1523 = vmatmul.msk.f32.gmra.mxu2 %vm224_vm0, %v2550_v30 }
 0x120   : > { %v917_v15 = vsel %vm224_vm0, %v2436_v0, %v1727_v44  ;;  %v867_v26 = vsel %vm224_vm0, %v2413_v52, %v1726_v58 }
 0x121   : > { %v884_v19 = vsel %vm879_vm2, %v867_v26, %v1731_v33  ;;  %v933_v46 = vsel %vm879_vm2, %v917_v15, %v1732_v56 }
 0x122   : > { %1070 = vmatmul.f32.gmra.mxu0 %v900_v57  ;;  %1135 = vmatmul.f32.gmra.mxu1 %v948_v55  ;;  %v901_v7 = vsel %vm896_vm3, %v884_v19, %v1736_v22  ;;  %v949_v0 = vsel %vm896_vm3, %v933_v46, %v1737_v25  ;;  %v1767_v57 = vunpack.i.h.bf16 %v1765_v8  ;;  %v1766_v55 = vunpack.i.l.bf16 %v1765_v8 }
 0x125   : > { %v1745_v11 = vpop.permute.xlu1 %1744  ;;  %v1740_v60 = vpop.permute.xlu0 %1739 }
 0x126   : > { %v1742_v5 = vunpack.i.h.bf16 %v1740_v60  ;;  %v1741_v40 = vunpack.i.l.bf16 %v1740_v60  ;;  %v1747_v42 = vunpack.i.h.bf16 %v1745_v11  ;;  %v1746_v52 = vunpack.i.l.bf16 %v1745_v11  ;;  %1524 = vmatmul.msk.f32.gmra.mxu2 %vm224_vm0, %v2565_v54  ;;  %v1795_v58 = vpop.permute.xlu2 %1794 }
 0x127   : > { %v1782_v11 = vunpack.i.h.bf16 %v1780_v39  ;;  %v1781_v60 = vunpack.i.l.bf16 %v1780_v39 }
 0x128   : > { %v918_v13 = vsel %vm224_vm0, %v2452_v16, %v1742_v5  ;;  %v868_v41 = vsel %vm224_vm0, %v2411_v50, %v1741_v40 }
 0x129   : > { %v885_v9 = vsel %vm879_vm2, %v868_v41, %v1746_v52  ;;  %v934_v29 = vsel %vm879_vm2, %v918_v13, %v1747_v42 }
 0x12a   : > { %1073 = vmatmul.f32.gmra.mxu0 %v901_v7  ;;  %1138 = vmatmul.f32.gmra.mxu1 %v949_v0  ;;  %v902_v30 = vsel %vm896_vm3, %v885_v9, %v1751_v10  ;;  %v950_v32 = vsel %vm896_vm3, %v934_v29, %v1752_v38  ;;  %v1797_v10 = vunpack.i.h.bf16 %v1795_v58  ;;  %v1796_v9 = vunpack.i.l.bf16 %v1795_v58  ;;  %v1270_v58 = vld [vmem:[%s2948_s2 + $0x70] sm:$0xff] }
 0x12d   : > { %v1760_v3 = vpop.permute.xlu1 %1759  ;;  %v1755_v61 = vpop.permute.xlu0 %1754 }
 0x12e   : > { %v1757_v21 = vunpack.i.h.bf16 %v1755_v61  ;;  %v1756_v4 = vunpack.i.l.bf16 %v1755_v61  ;;  %v1762_v16 = vunpack.i.h.bf16 %v1760_v3  ;;  %v1761_v44 = vunpack.i.l.bf16 %v1760_v3  ;;  %1525 = vmatmul.msk.f32.gmra.mxu2 %vm224_vm0, %v2578_v12  ;;  %v1810_v0 = vpop.permute.xlu2 %1809 }
 0x130   : > { %v919_v50 = vsel %vm224_vm0, %v2467_v28, %v1757_v21  ;;  %v869_v18 = vsel %vm224_vm0, %v2426_v59, %v1756_v4 }
 0x131   : > { %v886_v56 = vsel %vm879_vm2, %v869_v18, %v1761_v44  ;;  %v935_v33 = vsel %vm879_vm2, %v919_v50, %v1762_v16  ;;  %v1271_v18 = vld [vmem:[%s2948_s2 + $0x78] sm:$0xff] }
 0x132   : > { %1076 = vmatmul.f32.gmra.mxu0 %v902_v30  ;;  %1141 = vmatmul.f32.gmra.mxu1 %v950_v32  ;;  %v903_v54 = vsel %vm896_vm3, %v886_v56, %v1766_v55  ;;  %v951_v28 = vsel %vm896_vm3, %v935_v33, %v1767_v57  ;;  %v1812_v57 = vunpack.i.h.bf16 %v1810_v0  ;;  %v1811_v55 = vunpack.i.l.bf16 %v1810_v0 }
 0x133   : > { %1272 = vmatpush.msra.mxu3 %v1271_v18 }
 0x135   : > { %v1775_v15 = vpop.permute.xlu1 %1774  ;;  %v1770_v26 = vpop.permute.xlu0 %1769  ;;  %1273 = vmatpush.msra.mxu3 %v1270_v58 }
 0x136   : > { %v1772_v25 = vunpack.i.h.bf16 %v1770_v26  ;;  %v1771_v22 = vunpack.i.l.bf16 %v1770_v26  ;;  %v1777_v19 = vunpack.i.h.bf16 %v1775_v15  ;;  %v1776_v46 = vunpack.i.l.bf16 %v1775_v15  ;;  %1526 = vmatmul.msk.f32.gmra.mxu2 %vm224_vm0, %v2594_v63  ;;  %v1825_v32 = vpop.permute.xlu2 %1824 }
 0x138   : > { %v920_v59 = vsel %vm224_vm0, %v2482_v35, %v1772_v25  ;;  %v870_v8 = vsel %vm224_vm0, %v2442_v6, %v1771_v22 }
 0x139   : > { %v887_v5 = vsel %vm879_vm2, %v870_v8, %v1776_v46  ;;  %v936_v40 = vsel %vm879_vm2, %v920_v59, %v1777_v19  ;;  %v1269_v59 = vld [vmem:[%s2948_s2 + $0x68] sm:$0xff]  ;;  %v1268_v8 = vld [vmem:[%s2948_s2 + $0x60] sm:$0xff] }
 0x13a   : > { %1079 = vmatmul.f32.gmra.mxu0 %v903_v54  ;;  %1144 = vmatmul.f32.gmra.mxu1 %v951_v28  ;;  %v904_v12 = vsel %vm896_vm3, %v887_v5, %v1781_v60  ;;  %v952_v35 = vsel %vm896_vm3, %v936_v40, %v1782_v11  ;;  %v1827_v11 = vunpack.i.h.bf16 %v1825_v32  ;;  %v1826_v60 = vunpack.i.l.bf16 %v1825_v32 }
 0x13b   : > { %1274 = vmatpush.msra.mxu3 %v1269_v59 }
 0x13d   : > { %v1790_v7 = vpop.permute.xlu1 %1789  ;;  %v1785_v42 = vpop.permute.xlu0 %1784  ;;  %1275 = vmatpush.msra.mxu3 %v1268_v8 }
 0x13e   : > { %v1787_v52 = vunpack.i.h.bf16 %v1785_v42  ;;  %v1786_v13 = vunpack.i.l.bf16 %v1785_v42  ;;  %v1792_v41 = vunpack.i.h.bf16 %v1790_v7  ;;  %v1791_v38 = vunpack.i.l.bf16 %v1790_v7  ;;  %1527 = vmatmul.msk.f32.gmra.mxu2 %vm224_vm0, %v2610_v36  ;;  %v1840_v28 = vpop.permute.xlu2 %1839  ;;  %v477_v7 = vld [vmem:[#allocation2 + $0xda] sm:$0xff] }
 0x140   : > { %v921_v6 = vsel %vm224_vm0, %v2497_v43, %v1787_v52  ;;  %v871_v39 = vsel %vm224_vm0, %v2458_v20, %v1786_v13  ;;  %v1266_v52 = vld [vmem:[%s2948_s2 + $0x50] sm:$0xff] }
 0x141   : > { %v888_v29 = vsel %vm879_vm2, %v871_v39, %v1791_v38  ;;  %v937_v3 = vsel %vm879_vm2, %v921_v6, %v1792_v41 }
 0x142   : > { %1082 = vmatmul.f32.gmra.mxu0 %v904_v12  ;;  %1147 = vmatmul.f32.gmra.mxu1 %v952_v35  ;;  %v905_v63 = vsel %vm896_vm3, %v888_v29, %v1796_v9  ;;  %v953_v43 = vsel %vm896_vm3, %v937_v3, %v1797_v10  ;;  %v1265_v10 = vld [vmem:[%s2948_s2 + $0x48] sm:$0xff]  ;;  %v1264_v9 = vld [vmem:[%s2948_s2 + $0x40] sm:$0xff]  ;;  %v1842_v29 = vunpack.i.h.bf16 %v1840_v28  ;;  %v1841_v3 = vunpack.i.l.bf16 %v1840_v28 }
 0x145   : > { %v1805_v61 = vpop.permute.xlu1 %1804  ;;  %v1800_v21 = vpop.permute.xlu0 %1799 }
 0x146   : > { %v1802_v4 = vunpack.i.h.bf16 %v1800_v21  ;;  %v1801_v30 = vunpack.i.l.bf16 %v1800_v21  ;;  %v1807_v16 = vunpack.i.h.bf16 %v1805_v61  ;;  %v1806_v44 = vunpack.i.l.bf16 %v1805_v61  ;;  %1528 = vmatmul.msk.f32.gmra.mxu2 %vm224_vm0, %v2622_v17  ;;  %v1855_v39 = vpop.permute.xlu2 %1854  ;;  %v1263_v21 = vld [vmem:[%s2948_s2 + $0x38] sm:$0xff] }
 0x148   : > { %v922_v20 = vsel %vm224_vm0, %v2512_v49, %v1802_v4  ;;  %v872_v50 = vsel %vm224_vm0, %v2473_v31, %v1801_v30  ;;  %v478_v30 = vld [vmem:[#allocation2 + $0xe2] sm:$0xff] }
 0x149   : > { %v889_v36 = vsel %vm879_vm2, %v872_v50, %v1806_v44  ;;  %v938_v49 = vsel %vm879_vm2, %v922_v20, %v1807_v16 }
 0x14a   : > { %1085 = vmatmul.f32.gmra.mxu0 %v905_v63  ;;  %1150 = vmatmul.f32.gmra.mxu1 %v953_v43  ;;  %v906_v26 = vsel %vm896_vm3, %v889_v36, %v1811_v55  ;;  %v954_v25 = vsel %vm896_vm3, %v938_v49, %v1812_v57  ;;  %v1262_v43 = vld [vmem:[%s2948_s2 + $0x30] sm:$0xff]  ;;  %v1261_v57 = vld [vmem:[%s2948_s2 + $0x28] sm:$0xff]  ;;  %v1260_v55 = vld [vmem:[%s2948_s2 + $0x20] sm:$0xff]  ;;  %v1857_v36 = vunpack.i.h.bf16 %v1855_v39  ;;  %v1856_v49 = vunpack.i.l.bf16 %v1855_v39 }
 0x14d   : > { %v1820_v56 = vpop.permute.xlu1 %1819  ;;  %v1815_v33 = vpop.permute.xlu0 %1814 }
 0x14e   : > { %v1817_v31 = vunpack.i.h.bf16 %v1815_v33  ;;  %v1816_v15 = vunpack.i.l.bf16 %v1815_v33  ;;  %v1822_v22 = vunpack.i.h.bf16 %v1820_v56  ;;  %v1821_v54 = vunpack.i.l.bf16 %v1820_v56  ;;  %1529 = vmatmul.msk.f32.gmra.mxu2 %vm224_vm0, %v477_v7 }
 0x150   : > { %v923_v19 = vsel %vm224_vm0, %v2527_v24, %v1817_v31  ;;  %v873_v46 = vsel %vm224_vm0, %v2488_v37, %v1816_v15  ;;  %v1267_v37 = vld [vmem:[%s2948_s2 + $0x58] sm:$0xff] }
 0x151   : > { %v890_v17 = vsel %vm879_vm2, %v873_v46, %v1821_v54  ;;  %v939_v24 = vsel %vm879_vm2, %v923_v19, %v1822_v22  ;;  %1276 = vmatpush.msra.mxu3 %v1267_v37  ;;  %v1258_v46 = vld [vmem:[%s2948_s2 + $0x10] sm:$0xff] }
 0x152   : > { %1088 = vmatmul.f32.gmra.mxu0 %v906_v26  ;;  %1153 = vmatmul.f32.gmra.mxu1 %v954_v25  ;;  %v907_v13 = vsel %vm896_vm3, %v890_v17, %v1826_v60  ;;  %v955_v12 = vsel %vm896_vm3, %v939_v24, %v1827_v11  ;;  %v1259_v25 = vld [vmem:[%s2948_s2 + $0x18] sm:$0xff]  ;;  %v1257_v11 = vld [vmem:[%s2948_s2 + $0x8] sm:$0xff] }
 0x153   : > { %1277 = vmatpush.msra.mxu3 %v1266_v52 }
 0x155   : > { %v1835_v5 = vpop.permute.xlu1 %1834  ;;  %v1830_v40 = vpop.permute.xlu0 %1829  ;;  %1278 = vmatpush.msra.mxu3 %v1265_v10 }
 0x156   : > { %v1832_v0 = vunpack.i.h.bf16 %v1830_v40  ;;  %v1831_v42 = vunpack.i.l.bf16 %v1830_v40  ;;  %v1837_v35 = vunpack.i.h.bf16 %v1835_v5  ;;  %v1836_v41 = vunpack.i.l.bf16 %v1835_v5  ;;  %1530 = vmatmul.msk.f32.gmra.mxu2 %vm224_vm0, %v478_v30 }
 0x157   : > { %1279 = vmatpush.msra.mxu3 %v1264_v9 }
 0x158   : > { %v924_v38 = vsel %vm224_vm0, %v2542_v62, %v1832_v0  ;;  %v874_v6 = vsel %vm224_vm0, %v2503_v45, %v1831_v42 }
 0x159   : > { %v891_v62 = vsel %vm879_vm2, %v874_v6, %v1836_v41  ;;  %v940_v61 = vsel %vm879_vm2, %v924_v38, %v1837_v35  ;;  %1280 = vmatpush.msra.mxu3 %v1263_v21 }
 0x15a   : > { %1091 = vmatmul.f32.gmra.mxu0 %v907_v13  ;;  %1156 = vmatmul.f32.gmra.mxu1 %v955_v12  ;;  %v908_v16 = vsel %vm896_vm3, %v891_v62, %v1841_v3  ;;  %v956_v44 = vsel %vm896_vm3, %v940_v61, %v1842_v29 }
 0x15b   : > { %1281 = vmatpush.msra.mxu3 %v1262_v43 }
 0x15d   : > { %v1850_v45 = vpop.permute.xlu1 %1849  ;;  %v1845_v4 = vpop.permute.xlu0 %1844  ;;  %1282 = vmatpush.msra.mxu3 %v1261_v57 }
 0x15e   : > { %v1847_v32 = vunpack.i.h.bf16 %v1845_v4  ;;  %v1846_v63 = vunpack.i.l.bf16 %v1845_v4  ;;  %v1852_v20 = vunpack.i.h.bf16 %v1850_v45  ;;  %v1851_v50 = vunpack.i.l.bf16 %v1850_v45 }
 0x15f   : > { %1283 = vmatpush.msra.mxu3 %v1260_v55 }
 0x160   : > { %v925_v18 = vsel %vm224_vm0, %v2557_v47, %v1847_v32  ;;  %v875_v58 = vsel %vm224_vm0, %v2518_v53, %v1846_v63  ;;  %v1870_v53 = vpop.permute.xlu2 %1869 }
 0x161   : > { %v892_v56 = vsel %vm879_vm2, %v875_v58, %v1851_v50  ;;  %v941_v47 = vsel %vm879_vm2, %v925_v18, %v1852_v20  ;;  %1284 = vmatpush.msra.mxu3 %v1259_v25  ;;  %v1872_v60 = vunpack.i.h.bf16 %v1870_v53  ;;  %v1871_v17 = vunpack.i.l.bf16 %v1870_v53  ;;  %v1192_v24 = vpop.f32.mrf.mxu2 }
 0x162   : > { %1094 = vmatmul.f32.gmra.mxu0 %v908_v16  ;;  %1159 = vmatmul.f32.gmra.mxu1 %v956_v44  ;;  %v909_v22 = vsel %vm896_vm3, %v892_v56, %v1856_v49  ;;  %v957_v54 = vsel %vm896_vm3, %v941_v47, %v1857_v36 }
 0x163   : > { %1285 = vmatpush.msra.mxu3 %v1258_v46 }
 0x165   : > { %v1865_v33 = vpop.permute.xlu1 %1864  ;;  %v1860_v31 = vpop.permute.xlu0 %1859  ;;  %1286 = vmatpush.msra.mxu3 %v1257_v11 }
 0x166   : > { %v1862_v15 = vunpack.i.h.bf16 %v1860_v31  ;;  %v1861_v26 = vunpack.i.l.bf16 %v1860_v31  ;;  %v1867_v28 = vunpack.i.h.bf16 %v1865_v33  ;;  %v1866_v19 = vunpack.i.l.bf16 %v1865_v33 }
 0x168   : > { %v926_v59 = vsel %vm224_vm0, %v2573_v48, %v1862_v15  ;;  %v876_v8 = vsel %vm224_vm0, %v2533_v34, %v1861_v26  ;;  %v1256_v34 = vld [vmem:[%s2948_s2] sm:$0xff]  ;;  %v1885_v42 = vpop.permute.xlu2 %1884 }
 0x169   : > { %v893_v5 = vsel %vm879_vm2, %v876_v8, %v1866_v19  ;;  %v942_v37 = vsel %vm879_vm2, %v926_v59, %v1867_v28  ;;  %1287 = vmatpush.msra.mxu3 %v1256_v34  ;;  %v1887_v6 = vunpack.i.h.bf16 %v1885_v42  ;;  %v1886_v39 = vunpack.i.l.bf16 %v1885_v42  ;;  %v1195_v10 = vpop.f32.mrf.mxu2 }
 0x16a   : > { %1097 = vmatmul.f32.gmra.mxu0 %v909_v22  ;;  %1162 = vmatmul.f32.gmra.mxu1 %v957_v54  ;;  %v910_v52 = vsel %vm896_vm3, %v893_v5, %v1871_v17  ;;  %v958_v13 = vsel %vm896_vm3, %v942_v37, %v1872_v60 }
 0x16d   : > { %v1880_v40 = vpop.permute.xlu1 %1879  ;;  %v1875_v48 = vpop.permute.xlu0 %1874 }
 0x16e   : > { %v1877_v7 = vunpack.i.h.bf16 %v1875_v48  ;;  %v1876_v0 = vunpack.i.l.bf16 %v1875_v48  ;;  %v1882_v12 = vunpack.i.h.bf16 %v1880_v40  ;;  %v1881_v35 = vunpack.i.l.bf16 %v1880_v40 }
 0x170   : > { %v927_v41 = vsel %vm224_vm0, %v2588_v27, %v1877_v7  ;;  %v877_v38 = vsel %vm224_vm0, %v2548_v14, %v1876_v0  ;;  %v1900_v14 = vpop.permute.xlu2 %1899 }
 0x171   : > { %v894_v9 = vsel %vm879_vm2, %v877_v38, %v1881_v35  ;;  %v943_v29 = vsel %vm879_vm2, %v927_v41, %v1882_v12  ;;  %v1902_v43 = vunpack.i.h.bf16 %v1900_v14  ;;  %v1901_v16 = vunpack.i.l.bf16 %v1900_v14  ;;  %v1198_v50 = vpop.f32.mrf.mxu2 }
 0x172   : > { %1100 = vmatmul.f32.gmra.mxu0 %v910_v52  ;;  %1165 = vmatmul.f32.gmra.mxu1 %v958_v13  ;;  %v911_v21 = vsel %vm896_vm3, %v894_v9, %v1886_v39  ;;  %v959_v27 = vsel %vm896_vm3, %v943_v29, %v1887_v6 }
 0x175   : > { %v1890_v3 = vpop.permute.xlu0 %1889  ;;  %v1895_v62 = vpop.permute.xlu1 %1894 }
 0x176   : > { %v1892_v61 = vunpack.i.h.bf16 %v1890_v3  ;;  %v1891_v45 = vunpack.i.l.bf16 %v1890_v3  ;;  %v1897_v4 = vunpack.i.h.bf16 %v1895_v62  ;;  %v1896_v30 = vunpack.i.l.bf16 %v1895_v62 }
 0x178   : > { %v928_v32 = vsel %vm224_vm0, %v2604_v23, %v1892_v61  ;;  %v878_v63 = vsel %vm224_vm0, %v2563_v51, %v1891_v45 }
 0x179   : > { %v895_v44 = vsel %vm879_vm2, %v878_v63, %v1896_v30  ;;  %v944_v20 = vsel %vm879_vm2, %v928_v32, %v1897_v4  ;;  %v1201_v57 = vpop.f32.mrf.mxu2 }
 0x17a   : > { %1103 = vmatmul.f32.gmra.mxu0 %v911_v21  ;;  %1168 = vmatmul.f32.gmra.mxu1 %v959_v27  ;;  %v912_v18 = vsel %vm896_vm3, %v895_v44, %v1901_v16  ;;  %v960_v58 = vsel %vm896_vm3, %v944_v20, %v1902_v43 }
 0x181   : > { %v1204_v53 = vpop.f32.mrf.mxu2 }
 0x182   : > { %1106 = vmatmul.f32.gmra.mxu0 %v912_v18  ;;  %1171 = vmatmul.f32.gmra.mxu1 %v960_v58 }
 0x187   : > { %v1062_v23 = vpop.f32.mrf.mxu0  ;;  %v1127_v55 = vpop.f32.mrf.mxu1 }
 0x188   : > { %v1128_v36 = vadd.f32 %v1127_v55, %v1062_v23 }
 0x189   : > { %v1207_v28 = vpop.f32.mrf.mxu2 }
 0x18a   : > { %v1193_v51 = vadd.f32 %v1192_v24, %v1128_v36 }
 0x18c   : > { %v1240_v49 = vmax.f32 %v1193_v51, 0.0 }
 0x18e   : > { %1288 = vmatmul.f32.vlgmr.msra.gmra.mxu3 %v1240_v49 }
 0x18f   : > { %v1065_v56 = vpop.f32.mrf.mxu0  ;;  %v1130_v47 = vpop.f32.mrf.mxu1 }
 0x190   : > { %v1131_v33 = vadd.f32 %v1130_v47, %v1065_v56 }
 0x191   : > { %v1210_v17 = vpop.f32.mrf.mxu2 }
 0x192   : > { %v1196_v31 = vadd.f32 %v1195_v10, %v1131_v33 }
 0x194   : > { %v1241_v15 = vmax.f32 %v1196_v31, 0.0 }
 0x196   : > { %1291 = vmatmul.f32.gmra.mxu3 %v1241_v15 }
 0x197   : > { %v1068_v26 = vpop.f32.mrf.mxu0  ;;  %v1133_v25 = vpop.f32.mrf.mxu1 }
 0x198   : > { %v1134_v22 = vadd.f32 %v1133_v25, %v1068_v26 }
 0x199   : > { %v1213_v48 = vpop.f32.mrf.mxu2 }
 0x19a   : > { %v1199_v54 = vadd.f32 %v1198_v50, %v1134_v22 }
 0x19c   : > { %v1242_v19 = vmax.f32 %v1199_v54, 0.0 }
 0x19e   : > { %1294 = vmatmul.f32.gmra.mxu3 %v1242_v19 }
 0x19f   : > { %v1071_v46 = vpop.f32.mrf.mxu0  ;;  %v1136_v59 = vpop.f32.mrf.mxu1 }
 0x1a0   : > { %v1137_v8 = vadd.f32 %v1136_v59, %v1071_v46 }
 0x1a1   : > { %v1216_v38 = vpop.f32.mrf.mxu2 }
 0x1a2   : > { %v1202_v11 = vadd.f32 %v1201_v57, %v1137_v8 }
 0x1a4   : > { %v1243_v60 = vmax.f32 %v1202_v11, 0.0 }
 0x1a6   : > { %1297 = vmatmul.f32.gmra.mxu3 %v1243_v60 }
 0x1a7   : > { %v1074_v24 = vpop.f32.mrf.mxu0  ;;  %v1139_v5 = vpop.f32.mrf.mxu1 }
 0x1a8   : > { %v1140_v37 = vadd.f32 %v1139_v5, %v1074_v24 }
 0x1a9   : > { %v1219_v62 = vpop.f32.mrf.mxu2 }
 0x1aa   : > { %v1205_v40 = vadd.f32 %v1204_v53, %v1140_v37 }
 0x1ac   : > { %v1244_v34 = vmax.f32 %v1205_v40, 0.0 }
 0x1ae   : > { %1300 = vmatmul.f32.gmra.mxu3 %v1244_v34 }
 0x1af   : > { %v1077_v7 = vpop.f32.mrf.mxu0  ;;  %v1142_v0 = vpop.f32.mrf.mxu1 }
 0x1b0   : > { %v1143_v42 = vadd.f32 %v1142_v0, %v1077_v7 }
 0x1b1   : > { %v1222_v14 = vpop.f32.mrf.mxu2 }
 0x1b2   : > { %v1208_v52 = vadd.f32 %v1207_v28, %v1143_v42 }
 0x1b4   : > { %v1245_v13 = vmax.f32 %v1208_v52, 0.0 }
 0x1b6   : > { %1303 = vmatmul.f32.gmra.mxu3 %v1245_v13 }
 0x1b7   : > { %v1080_v12 = vpop.f32.mrf.mxu0  ;;  %v1145_v35 = vpop.f32.mrf.mxu1 }
 0x1b8   : > { %v1146_v41 = vadd.f32 %v1145_v35, %v1080_v12  ;;  %v3005_v35 = vld [vmem:[#allocation18_spill] sm:$0xff] }
 0x1b9   : > { %v1225_v20 = vpop.f32.mrf.mxu2 }
 0x1ba   : > { %v1211_v6 = vadd.f32 %v1210_v17, %v1146_v41 }
 0x1bc   : > { %v1246_v39 = vmax.f32 %v1211_v6, 0.0  ;;  %v3006_v6 = vld [vmem:[#allocation19_spill] sm:$0xff] }
 0x1be   : > { %1306 = vmatmul.f32.gmra.mxu3 %v1246_v39 }
 0x1bf   : > { %v1083_v10 = vpop.f32.mrf.mxu0  ;;  %v1148_v9 = vpop.f32.mrf.mxu1 }
 0x1c0   : > { %v1149_v29 = vadd.f32 %v1148_v9, %v1083_v10  ;;  %v3007_v10 = vld [vmem:[#allocation20_spill] sm:$0xff] }
 0x1c1   : > { %v1228_v49 = vpop.f32.mrf.mxu2 }
 0x1c2   : > { %v1214_v3 = vadd.f32 %v1213_v48, %v1149_v29  ;;  %v3008_v29 = vld [vmem:[#allocation21_spill] sm:$0xff] }
 0x1c4   : > { %v1247_v61 = vmax.f32 %v1214_v3, 0.0 }
 0x1c6   : > { %1309 = vmatmul.f32.gmra.mxu3 %v1247_v61  ;;  %v3009_v61 = vld [vmem:[#allocation22_spill] sm:$0xff] }
 0x1c7   : > { %v1086_v45 = vpop.f32.mrf.mxu0  ;;  %v1151_v21 = vpop.f32.mrf.mxu1 }
 0x1c8   : > { %v1152_v27 = vadd.f32 %v1151_v21, %v1086_v45 }
 0x1c9   : > { %v1231_v26 = vpop.f32.mrf.mxu2 }
 0x1ca   : > { %v1217_v4 = vadd.f32 %v1216_v38, %v1152_v27  ;;  %v3010_v27 = vld [vmem:[#allocation23_spill] sm:$0xff] }
 0x1cc   : > { %v1248_v30 = vmax.f32 %v1217_v4, 0.0 }
 0x1ce   : > { %1312 = vmatmul.f32.gmra.mxu3 %v1248_v30 }
 0x1cf   : > { %v1089_v32 = vpop.f32.mrf.mxu0  ;;  %v1154_v63 = vpop.f32.mrf.mxu1 }
 0x1d0   : > { %v1155_v43 = vadd.f32 %v1154_v63, %v1089_v32 }
 0x1d1   : > { %v1234_v59 = vpop.f32.mrf.mxu2 }
 0x1d2   : > { %v1220_v16 = vadd.f32 %v1219_v62, %v1155_v43  ;;  %v3012_v43 = vld [vmem:[#allocation25_spill] sm:$0xff] }
 0x1d4   : > { %v1249_v44 = vmax.f32 %v1220_v16, 0.0 }
 0x1d6   : > { %1315 = vmatmul.f32.gmra.mxu3 %v1249_v44 }
 0x1d7   : > { %v1092_v50 = vpop.f32.mrf.mxu0  ;;  %v1157_v18 = vpop.f32.mrf.mxu1 }
 0x1d8   : > { %v1158_v58 = vadd.f32 %v1157_v18, %v1092_v50 }
 0x1d9   : > { %v1237_v5 = vpop.f32.mrf.mxu2 }
 0x1da   : > { %v1223_v57 = vadd.f32 %v1222_v14, %v1158_v58  ;;  %v3011_v14 = vld [vmem:[#allocation24_spill] sm:$0xff]  ;;  %v3014_v58 = vld [vmem:[#allocation27_spill] sm:$0xff] }
 0x1dc   : > { %v1250_v23 = vmax.f32 %v1223_v57, 0.0 }
 0x1de   : > { %1318 = vmatmul.f32.gmra.mxu3 %v1250_v23 }
 0x1df   : > { %v1095_v55 = vpop.f32.mrf.mxu0  ;;  %v1160_v36 = vpop.f32.mrf.mxu1 }
 0x1e0   : > { %v1161_v51 = vadd.f32 %v1160_v36, %v1095_v55  ;;  %v3015_v55 = vld [vmem:[#allocation28_spill] sm:$0xff] }
 0x1e2   : > { %v1226_v56 = vadd.f32 %v1225_v20, %v1161_v51  ;;  %v3013_v20 = vld [vmem:[#allocation26_spill] sm:$0xff] }
 0x1e4   : > { %v1251_v47 = vmax.f32 %v1226_v56, 0.0 }
 0x1e6   : > { %1321 = vmatmul.f32.gmra.mxu3 %v1251_v47 }
 0x1e7   : > { %v1098_v33 = vpop.f32.mrf.mxu0  ;;  %v1163_v53 = vpop.f32.mrf.mxu1 }
 0x1e8   : > { %v1164_v31 = vadd.f32 %v1163_v53, %v1098_v33  ;;  %v3017_v33 = vld [vmem:[#allocation30_spill] sm:$0xff] }
 0x1ea   : > { %v1229_v15 = vadd.f32 %v1228_v49, %v1164_v31  ;;  %v3016_v49 = vld [vmem:[#allocation29_spill] sm:$0xff] }
 0x1ec   : > { %v1252_v25 = vmax.f32 %v1229_v15, 0.0  ;;  %v3021_v15 = vld [vmem:[#allocation31_spill] sm:$0xff] }
 0x1ee   : > { %1324 = vmatmul.f32.gmra.mxu3 %v1252_v25 }
 0x1ef   : > { %v1101_v22 = vpop.f32.mrf.mxu0  ;;  %v1166_v54 = vpop.f32.mrf.mxu1 }
 0x1f0   : > { %v1167_v28 = vadd.f32 %v1166_v54, %v1101_v22 }
 0x1f2   : > { %v1232_v19 = vadd.f32 %v1231_v26, %v1167_v28 }
 0x1f4   : > { %v1253_v46 = vmax.f32 %v1232_v19, 0.0 }
 0x1f6   : > { %1327 = vmatmul.f32.gmra.mxu3 %v1253_v46 }
 0x1f7   : > { %v1104_v8 = vpop.f32.mrf.mxu0  ;;  %v1169_v11 = vpop.f32.mrf.mxu1 }
 0x1f8   : > { %v1170_v60 = vadd.f32 %v1169_v11, %v1104_v8 }
 0x1fa   : > { %v1235_v17 = vadd.f32 %v1234_v59, %v1170_v60 }
 0x1fc   : > { %v1254_v24 = vmax.f32 %v1235_v17, 0.0 }
 0x1fe   : > { %1330 = vmatmul.f32.gmra.mxu3 %v1254_v24 }
 0x1ff   : > { %v1107_v37 = vpop.f32.mrf.mxu0  ;;  %v1172_v40 = vpop.f32.mrf.mxu1 }
 0x200   : > { %v1173_v34 = vadd.f32 %v1172_v40, %v1107_v37 }
 0x202   : > { %v1238_v48 = vadd.f32 %v1237_v5, %v1173_v34 }
 0x204   : > { %v1255_v7 = vmax.f32 %v1238_v48, 0.0 }
 0x206   : > { %1333 = vmatmul.f32.gmra.mxu3 %v1255_v7 }
 0x211   : > { %v1289_v0 = vpop.f32.mrf.mxu3 }
 0x212   : > { %v1337_v42 = vadd.f32 %v1289_v0, %v2303_v1 }
 0x214   : > { %1353 = vst.msk [vmem:[%s2389_s10] sm:$0xff] %vm224_vm0, %v1337_v42 }
 0x219   : > { %v1292_v52 = vpop.f32.mrf.mxu3 }
 0x21a   : > { %v1338_v13 = vadd.f32 %v1292_v52, %v2307_v2 }
 0x21c   : > { %1354 = vst.msk [vmem:[%s2389_s10 + $0x8] sm:$0xff] %vm224_vm0, %v1338_v13 }
 0x221   : > { %v1295_v12 = vpop.f32.mrf.mxu3 }
 0x222   : > { %v1339_v41 = vadd.f32 %v1295_v12, %v3005_v35 }
 0x224   : > { %1355 = vst.msk [vmem:[%s2389_s10 + $0x10] sm:$0xff] %vm224_vm0, %v1339_v41 }
 0x229   : > { %v1298_v38 = vpop.f32.mrf.mxu3 }
 0x22a   : > { %v1340_v39 = vadd.f32 %v1298_v38, %v3006_v6 }
 0x22c   : > { %1356 = vst.msk [vmem:[%s2389_s10 + $0x18] sm:$0xff] %vm224_vm0, %v1340_v39 }
 0x231   : > { %v1301_v1 = vpop.f32.mrf.mxu3 }
 0x232   : > { %v1341_v9 = vadd.f32 %v1301_v1, %v3007_v10 }
 0x234   : > { %1357 = vst.msk [vmem:[%s2389_s10 + $0x20] sm:$0xff] %vm224_vm0, %v1341_v9 }
 0x239   : > { %v1304_v2 = vpop.f32.mrf.mxu3 }
 0x23a   : > { %v1342_v3 = vadd.f32 %v1304_v2, %v3008_v29 }
 0x23c   : > { %1358 = vst.msk [vmem:[%s2389_s10 + $0x28] sm:$0xff] %vm224_vm0, %v1342_v3 }
 0x241   : > { %v1307_v62 = vpop.f32.mrf.mxu3 }
 0x242   : > { %v1343_v45 = vadd.f32 %v1307_v62, %v3009_v61 }
 0x244   : > { %1359 = vst.msk [vmem:[%s2389_s10 + $0x30] sm:$0xff] %vm224_vm0, %v1343_v45 }
 0x249   : > { %v1310_v21 = vpop.f32.mrf.mxu3 }
 0x24a   : > { %v1344_v4 = vadd.f32 %v1310_v21, %v3010_v27 }
 0x24c   : > { %1360 = vst.msk [vmem:[%s2389_s10 + $0x38] sm:$0xff] %vm224_vm0, %v1344_v4 }
 0x251   : > { %v1313_v30 = vpop.f32.mrf.mxu3 }
 0x252   : > { %v1345_v32 = vadd.f32 %v1313_v30, %v3011_v14 }
 0x254   : > { %1361 = vst.msk [vmem:[%s2389_s10 + $0x40] sm:$0xff] %vm224_vm0, %v1345_v32 }
 0x259   : > { %v1316_v63 = vpop.f32.mrf.mxu3 }
 0x25a   : > { %v1346_v16 = vadd.f32 %v1316_v63, %v3012_v43 }
 0x25c   : > { %1362 = vst.msk [vmem:[%s2389_s10 + $0x48] sm:$0xff] %vm224_vm0, %v1346_v16 }
 0x261   : > { %v1319_v44 = vpop.f32.mrf.mxu3 }
 0x262   : > { %v1347_v50 = vadd.f32 %v1319_v44, %v3013_v20 }
 0x264   : > { %1363 = vst.msk [vmem:[%s2389_s10 + $0x50] sm:$0xff] %vm224_vm0, %v1347_v50 }
 0x269   : > { %v1322_v18 = vpop.f32.mrf.mxu3 }
 0x26a   : > { %v1348_v57 = vadd.f32 %v1322_v18, %v3014_v58 }
 0x26c   : > { %1364 = vst.msk [vmem:[%s2389_s10 + $0x58] sm:$0xff] %vm224_vm0, %v1348_v57 }
 0x271   : > { %v1325_v23 = vpop.f32.mrf.mxu3 }
 0x272   : > { %v1349_v36 = vadd.f32 %v1325_v23, %v3015_v55 }
 0x274   : > { %1365 = vst.msk [vmem:[%s2389_s10 + $0x60] sm:$0xff] %vm224_vm0, %v1349_v36 }
 0x279   : > { %v1328_v51 = vpop.f32.mrf.mxu3 }
 0x27a   : > { %v1350_v56 = vadd.f32 %v1328_v51, %v3016_v49 }
 0x27c   : > { %1366 = vst.msk [vmem:[%s2389_s10 + $0x68] sm:$0xff] %vm224_vm0, %v1350_v56 }
 0x281   : > { %v1331_v47 = vpop.f32.mrf.mxu3 }
 0x282   : > { %v1351_v53 = vadd.f32 %v1331_v47, %v3017_v33 }
 0x284   : > { %1367 = vst.msk [vmem:[%s2389_s10 + $0x70] sm:$0xff] %vm224_vm0, %v1351_v53 }
 0x289   : > { %v1334_v31 = vpop.f32.mrf.mxu3 }
 0x28a   : > { %v1352_v26 = vadd.f32 %v1334_v31, %v3021_v15 }
 0x28c   : > { %1368 = vst.msk [vmem:[%s2389_s10 + $0x78] sm:$0xff] %vm224_vm0, %v1352_v26 }
 0x28d   : > { %1990 = shalt.err (!%p1987_p8)
}
 0x28e   : > { %s2098_s3 = smov 128   ;;  %s2099_s10 = smov 8  }
 0x28f   : > { %1548 = dma.vmem_to_hbm [thread:$0]  (%p2190_p6), %s1386_s29, 2048, %s1388_s25, %s1370_s18, %s2098_s3, %s2098_s3, %s2099_s10  }
 0x290 PF: > { %s3022_s5 = sld [smem:[#allocation12_spill]]  ;;  %p1565_p9 = scmp.ge.s32.totalorder %s2089_s22, 2 }
 0x292   : > { %p1559_p12 = pnand %p1565_p9, %p2196_p10 }
 0x294   : > { %p1560_p13 = pneg %p1559_p12 }
 0x296   : > { %s1402_s24 = sand.u32 1, %s3022_s5  }
 0x297   : > { %s1403_s20 = scalar_lea.sflag [#allocation5], %s1402_s24 }
 0x298   : > { %2044 = dma.done.wait (%p1560_p13), %s1403_s20, 2048  }
 0x299   : > { %2046 = vsyncadd (%p1560_p13), %s1403_s20, 4294965248  ;;  %s20_s22 = sadd.s32 1, %s2089_s22   ;;  %s3024_s18 = sld [smem:[#allocation13_spill]] }
 0x29a   : > { %p17_p1 = scmp.ge.s32.totalorder %s20_s22, 6   ;;  %s3025_s20 = sld [smem:[#allocation16_spill]] }
 0x29b   : > { %s3026_s6 = sld [smem:[#allocation17_spill]]  ;;  %s3027_s12 = smov %s2053_s13 }
 0x29c   : > { %s3028_s13 = smov %s2057_s14  ;;  %s3029_s14 = smov %s2241_s1 }
 0x29d   : > { %s3030_s15 = smov %s2065_s16  ;;  %s3031_s16 = smov %s2069_s17 }
 0x29e   : > { %s3032_s17 = smov %s2238_s9  ;;  %s3033_s19 = smov %s2085_s21 }
 0x29f   :  { %19 = sbr.rel (!%p17_p1) target bundleno = 13 (0xd), region = 95 }
 0x2a1   : > { %s3034_s21 = smov %s3026_s6 }
 0x2a4   :  { %1409 = vsyncpa [#allocation4], 1 }
 0x2a5   :  { %1411 = vsyncpa [#allocation4 + $0x1], 1 }
 0x2a6   :  { %1412 = vsyncpa [#allocation7], 1 }
 0x2a7   :  { %1413 = vsyncpa [#allocation5], 1 }
 0x2a8   :  { %1415 = vsyncpa [#allocation5 + $0x1], 1 }

</bundles_post_ra>
